<compile_context>
chip_gen: v7x
topology: tpu7x:2x2x1
jax: 0.10.0
libtpu: 0.0.40
codegen_flags: <defaults>
</compile_context>

<pallas_src>
import functools
import math

import jax
import jax.numpy as jnp
from jax.experimental import pallas as pl
from jax.experimental.pallas import tpu as pltpu

EPS = 1e-5  # nn.LayerNorm default


def _layernorm(x, gamma, beta):
    # PyTorch LayerNorm: biased variance, eps inside rsqrt.  Keep in f32.
    mu = jnp.mean(x, axis=-1, keepdims=True)
    var = jnp.mean((x - mu) ** 2, axis=-1, keepdims=True)
    return (x - mu) * jax.lax.rsqrt(var + EPS) * gamma + beta


def _gelu_exact(x):
    # nn.GELU() default = exact erf formulation.
    return 0.5 * x * (1.0 + jax.lax.erf(x * (1.0 / math.sqrt(2.0))))


def transformer_stack_kernel(x_ref,
                             g1_ref, b1_ref,
                             wqkv_ref, bqkv_ref,
                             wproj_ref, bproj_ref,
                             g2_ref, b2_ref,
                             wfc1_ref, bfc1_ref,
                             wfc2_ref, bfc2_ref,
                             gf_ref, bf_ref,
                             o_ref,
                             acc_ref,          # (N, C) f32 resident residual stream
                             *, num_heads):
    l = pl.program_id(1)
    n_layers = pl.num_programs(1)

    # Load the input once per batch element; residual stream stays in VMEM
    # (f32) for all L layer steps.
    @pl.when(l == 0)
    def _load_input():
        acc_ref[...] = x_ref[0].astype(jnp.float32)

    x = acc_ref[...]                              # (N, C) f32
    N, C = x.shape
    hd = C // num_heads
    scale = 1.0 / math.sqrt(hd)

    # ---------------- x = x + Attn(LN1(x)) ----------------
    xn = _layernorm(x, g1_ref[0], b1_ref[0])
    qkv = jnp.dot(xn.astype(jnp.bfloat16), wqkv_ref[0],
                  preferred_element_type=jnp.float32) + bqkv_ref[0]   # (N, 3C) f32

    # qkv column layout matches torch's reshape(B, N, 3, H, hd):
    #   [ q(h0..hH-1) | k(h0..hH-1) | v(h0..hH-1) ], each head contiguous hd cols.
    q = jnp.stack([qkv[:, 0 * C + h * hd:0 * C + (h + 1) * hd]
                   for h in range(num_heads)], axis=0).astype(jnp.bfloat16)  # (H,N,hd)
    k = jnp.stack([qkv[:, 1 * C + h * hd:1 * C + (h + 1) * hd]
                   for h in range(num_heads)], axis=0).astype(jnp.bfloat16)
    v = jnp.stack([qkv[:, 2 * C + h * hd:2 * C + (h + 1) * hd]
                   for h in range(num_heads)], axis=0).astype(jnp.bfloat16)

    # Batched-head attention (single MXU contraction per step, f32 accumulate).
    s = jnp.einsum('hqd,hkd->hqk', q, k,
                   preferred_element_type=jnp.float32) * scale        # (H, N, N)
    s = s - jnp.max(s, axis=-1, keepdims=True)
    p = jnp.exp(s)
    p = p * pl.reciprocal(jnp.sum(p, axis=-1, keepdims=True), approx=True)
    ctx = jnp.einsum('hqk,hkd->hqd', p.astype(jnp.bfloat16), v,
                     preferred_element_type=jnp.float32)              # (H, N, hd)
    attn = jnp.concatenate([ctx[h] for h in range(num_heads)], axis=-1)  # (N, C)
    attn = jnp.dot(attn.astype(jnp.bfloat16), wproj_ref[0],
                   preferred_element_type=jnp.float32) + bproj_ref[0]
    x = x + attn

    # ---------------- x = x + MLP(LN2(x)) ----------------
    xn = _layernorm(x, g2_ref[0], b2_ref[0])
    h1 = jnp.dot(xn.astype(jnp.bfloat16), wfc1_ref[0],
                 preferred_element_type=jnp.float32) + bfc1_ref[0]
    h1 = _gelu_exact(h1)
    h2 = jnp.dot(h1.astype(jnp.bfloat16), wfc2_ref[0],
                 preferred_element_type=jnp.float32) + bfc2_ref[0]
    x = x + h2

    acc_ref[...] = x

    # Final LayerNorm folded into the last layer step; output written once per b.
    @pl.when(l == n_layers - 1)
    def _finalize():
        o_ref[0] = _layernorm(x, gf_ref[...], bf_ref[...]).astype(o_ref.dtype)


def _vmem_limit_bytes():
    # Raise the default scoped VMEM limit (16/32 MiB) but keep headroom on v7x
    # (64 MiB physical per TensorCore).
    try:
        cap = pltpu.get_tpu_info().vmem_capacity_bytes
    except Exception:
        cap = 64 * 1024 * 1024
    return max(int(cap * 3 // 4), 48 * 1024 * 1024)


def run_transformer_stack(x, p, final, num_heads):
    B, N, C = x.shape
    L = p["w_qkv"].shape[0]
    hidden = p["w_fc1"].shape[-1]

    act_map = lambda b, l: (b, 0, 0)     # same block across L => resident output
    layer_map = lambda b, l: (l, 0, 0)   # per-layer weights, double-buffered over L
    fin_map = lambda b, l: (0, 0)

    in_specs = [
        pl.BlockSpec((1, N, C), act_map),
        pl.BlockSpec((1, 1, C), layer_map),         # g1
        pl.BlockSpec((1, 1, C), layer_map),         # b1
        pl.BlockSpec((1, C, 3 * C), layer_map),     # w_qkv (bf16)
        pl.BlockSpec((1, 1, 3 * C), layer_map),     # b_qkv
        pl.BlockSpec((1, C, C), layer_map),         # w_proj (bf16)
        pl.BlockSpec((1, 1, C), layer_map),         # b_proj
        pl.BlockSpec((1, 1, C), layer_map),         # g2
        pl.BlockSpec((1, 1, C), layer_map),         # b2
        pl.BlockSpec((1, C, hidden), layer_map),    # w_fc1 (bf16)
        pl.BlockSpec((1, 1, hidden), layer_map),    # b_fc1
        pl.BlockSpec((1, hidden, C), layer_map),    # w_fc2 (bf16)
        pl.BlockSpec((1, 1, C), layer_map),         # b_fc2
        pl.BlockSpec((1, C), fin_map),              # final norm gamma
        pl.BlockSpec((1, C), fin_map),              # final norm beta
    ]

    kernel = functools.partial(transformer_stack_kernel, num_heads=num_heads)
    return pl.pallas_call(
        kernel,
        out_shape=jax.ShapeDtypeStruct((B, N, C), x.dtype),
        grid=(B, L),
        in_specs=in_specs,
        out_specs=pl.BlockSpec((1, N, C), act_map),
        scratch_shapes=[pltpu.VMEM((N, C), jnp.float32)],
        compiler_params=pltpu.CompilerParams(
            dimension_semantics=("parallel", "arbitrary"),
            vmem_limit_bytes=_vmem_limit_bytes(),
        ),
    )(x,
      p["g1"], p["b1"],
      p["w_qkv"], p["b_qkv"],
      p["w_proj"], p["b_proj"],
      p["g2"], p["b2"],
      p["w_fc1"], p["b_fc1"],
      p["w_fc2"], p["b_fc2"],
      final["g"], final["b"])


@functools.partial(jax.jit, static_argnames=("num_heads",))
def transformer_forward(x, stacked_params, final_params, num_heads):
    return run_transformer_stack(x, stacked_params, final_params, num_heads)


def init_params(key, embed_dim, num_layers, mlp_ratio):
    C = embed_dim
    hidden = int(embed_dim * mlp_ratio)

    def lin_w(kk, fan_in, fan_out):
        bound = 1.0 / math.sqrt(fan_in)
        w = jax.random.uniform(kk, (num_layers, fan_in, fan_out),
                               jnp.float32, -bound, bound)
        return w.astype(jnp.bfloat16)          # bf16 weights for the MXU / HBM win

    ks = jax.random.split(key, 4)
    stacked = dict(
        g1=jnp.ones((num_layers, 1, C), jnp.float32),
        b1=jnp.zeros((num_layers, 1, C), jnp.float32),
        w_qkv=lin_w(ks[0], C, 3 * C),
        b_qkv=jnp.zeros((num_layers, 1, 3 * C), jnp.float32),
        w_proj=lin_w(ks[1], C, C),
        b_proj=jnp.zeros((num_layers, 1, C), jnp.float32),
        g2=jnp.ones((num_layers, 1, C), jnp.float32),
        b2=jnp.zeros((num_layers, 1, C), jnp.float32),
        w_fc1=lin_w(ks[2], C, hidden),
        b_fc1=jnp.zeros((num_layers, 1, hidden), jnp.float32),
        w_fc2=lin_w(ks[3], hidden, C),
        b_fc2=jnp.zeros((num_layers, 1, C), jnp.float32),
    )
    final = dict(g=jnp.ones((1, C), jnp.float32),
                 b=jnp.zeros((1, C), jnp.float32))
    return stacked, final


def _reference_forward(x, p, final, num_heads):
    # Pure-JAX f32 reference (weights upcast from bf16) for a sanity check.
    def ln(z, g, b):
        mu = jnp.mean(z, -1, keepdims=True)
        var = jnp.mean((z - mu) ** 2, -1, keepdims=True)
        return (z - mu) * jax.lax.rsqrt(var + EPS) * g + b

    x = x.astype(jnp.float32)
    B, N, C = x.shape
    H = num_heads
    hd = C // H
    L = p["w_qkv"].shape[0]
    for l in range(L):
        xn = ln(x, p["g1"][l], p["b1"][l])
        qkv = xn @ p["w_qkv"][l].astype(jnp.float32) + p["b_qkv"][l]
        qkv = qkv.reshape(B, N, 3, H, hd).transpose(2, 0, 3, 1, 4)
        q, k, v = qkv[0], qkv[1], qkv[2]
        s = jnp.einsum('bhqd,bhkd->bhqk', q, k) * (hd ** -0.5)
        a = jax.nn.softmax(s, axis=-1)
        ctx = jnp.einsum('bhqk,bhkd->bhqd', a, v).transpose(0, 2, 1, 3).reshape(B, N, C)
        x = x + ctx @ p["w_proj"][l].astype(jnp.float32) + p["b_proj"][l]
        xn = ln(x, p["g2"][l], p["b2"][l])
        h = jax.nn.gelu(xn @ p["w_fc1"][l].astype(jnp.float32) + p["b_fc1"][l],
                        approximate=False)
        x = x + h @ p["w_fc2"][l].astype(jnp.float32) + p["b_fc2"][l]
    return ln(x, final["g"], final["b"])


if __name__ == "__main__":
    # Small, lane-friendly demo shapes (C, 3C, hidden multiples of 128; N mult of 8).
    B, N, C = 2, 16, 128
    num_heads, num_layers, mlp_ratio = 4, 2, 4.0

    key = jax.random.PRNGKey(0)
    kx, kp = jax.random.split(key)
    x = jax.random.normal(kx, (B, N, C), jnp.float32)

    stacked, final = init_params(kp, C, num_layers, mlp_ratio)

    out = transformer_forward(x, stacked, final, num_heads)
    out = jax.block_until_ready(out)

    assert out.shape == (B, N, C)
    assert bool(jnp.all(jnp.isfinite(out)))

    ref = _reference_forward(x, stacked, final, num_heads)
    max_err = float(jnp.max(jnp.abs(out - ref)))
    # bf16 matmul operands + approx softmax reciprocal => small deltas vs f32 ref.
    assert max_err < 0.25, f"max abs error vs reference too large: {max_err}"

    print("KERNEL_OK")
</pallas_src>

<mosaic_0001>
module attributes {stable_mosaic.version = 11 : i64} {
  func.func @transformer_stack_kernel(%arg0: i32, %arg1: i32, %arg2: memref<1x16x128xf32, #tpu.memory_space<vmem>>, %arg3: memref<1x1x128xf32, #tpu.memory_space<vmem>>, %arg4: memref<1x1x128xf32, #tpu.memory_space<vmem>>, %arg5: memref<1x128x384xbf16, #tpu.memory_space<vmem>>, %arg6: memref<1x1x384xf32, #tpu.memory_space<vmem>>, %arg7: memref<1x128x128xbf16, #tpu.memory_space<vmem>>, %arg8: memref<1x1x128xf32, #tpu.memory_space<vmem>>, %arg9: memref<1x1x128xf32, #tpu.memory_space<vmem>>, %arg10: memref<1x1x128xf32, #tpu.memory_space<vmem>>, %arg11: memref<1x128x512xbf16, #tpu.memory_space<vmem>>, %arg12: memref<1x1x512xf32, #tpu.memory_space<vmem>>, %arg13: memref<1x512x128xbf16, #tpu.memory_space<vmem>>, %arg14: memref<1x1x128xf32, #tpu.memory_space<vmem>>, %arg15: memref<1x128xf32, #tpu.memory_space<vmem>>, %arg16: memref<1x128xf32, #tpu.memory_space<vmem>>, %arg17: memref<1x16x128xf32, #tpu.memory_space<vmem>>, %arg18: memref<16x128xf32, #tpu.memory_space<vmem>>) attributes {dimension_semantics = [#tpu.dimension_semantics<parallel>, #tpu.dimension_semantics<arbitrary>], iteration_bounds = array<i64: 2, 2>, scalar_prefetch = 0 : i64, scratch_operands = 1 : i64, tpu.core_type = #tpu.core_type<tc>, window_params = [{transform_indices = @transform_0, window_bounds = array<i64: 1, 16, 128>}, {transform_indices = @transform_1, window_bounds = array<i64: 1, 1, 128>}, {transform_indices = @transform_2, window_bounds = array<i64: 1, 1, 128>}, {transform_indices = @transform_3, window_bounds = array<i64: 1, 128, 384>}, {transform_indices = @transform_4, window_bounds = array<i64: 1, 1, 384>}, {transform_indices = @transform_5, window_bounds = array<i64: 1, 128, 128>}, {transform_indices = @transform_6, window_bounds = array<i64: 1, 1, 128>}, {transform_indices = @transform_7, window_bounds = array<i64: 1, 1, 128>}, {transform_indices = @transform_8, window_bounds = array<i64: 1, 1, 128>}, {transform_indices = @transform_9, window_bounds = array<i64: 1, 128, 512>}, {transform_indices = @transform_10, window_bounds = array<i64: 1, 1, 512>}, {transform_indices = @transform_11, window_bounds = array<i64: 1, 512, 128>}, {transform_indices = @transform_12, window_bounds = array<i64: 1, 1, 128>}, {pipeline_mode = #tpu.pipeline_mode<synchronous>, transform_indices = @transform_13, window_bounds = array<i64: 1, 128>}, {pipeline_mode = #tpu.pipeline_mode<synchronous>, transform_indices = @transform_14, window_bounds = array<i64: 1, 128>}, {transform_indices = @transform_15, window_bounds = array<i64: 1, 16, 128>}]} {
    %c0_i32 = arith.constant 0 : i32
    %0 = arith.cmpi eq, %arg1, %c0_i32 : i32
    %1 = arith.extui %0 : i1 to i32
    %c0_i32_0 = arith.constant 0 : i32
    %2 = arith.cmpi ne, %1, %c0_i32_0 : i32
    scf.if %2 {
      %c0_62 = arith.constant 0 : index
      %c0_63 = arith.constant 0 : index
      %c0_64 = arith.constant 0 : index
      %156 = vector.load %arg2[%c0_62, %c0_63, %c0_64] : memref<1x16x128xf32, #tpu.memory_space<vmem>>, vector<1x16x128xf32>
      %157 = vector.shape_cast %156 : vector<1x16x128xf32> to vector<16x128xf32>
      %c0_65 = arith.constant 0 : index
      %c0_66 = arith.constant 0 : index
      %158 = vector.load %arg18[%c0_65, %c0_66] : memref<16x128xf32, #tpu.memory_space<vmem>>, vector<16x128xf32>
      tpu.vector_store %arg18[%c0_65, %c0_66], %157 {strides = array<i32>} : memref<16x128xf32, #tpu.memory_space<vmem>>, vector<16x128xf32>,
    } else {
    }
    %c0 = arith.constant 0 : index
    %c0_1 = arith.constant 0 : index
    %3 = vector.load %arg18[%c0, %c0_1] : memref<16x128xf32, #tpu.memory_space<vmem>>, vector<16x128xf32>
    %c0_2 = arith.constant 0 : index
    %c0_3 = arith.constant 0 : index
    %c0_4 = arith.constant 0 : index
    %4 = vector.load %arg3[%c0_2, %c0_3, %c0_4] : memref<1x1x128xf32, #tpu.memory_space<vmem>>, vector<1x1x128xf32>
    %5 = vector.shape_cast %4 : vector<1x1x128xf32> to vector<1x128xf32>
    %c0_5 = arith.constant 0 : index
    %c0_6 = arith.constant 0 : index
    %c0_7 = arith.constant 0 : index
    %6 = vector.load %arg4[%c0_5, %c0_6, %c0_7] : memref<1x1x128xf32, #tpu.memory_space<vmem>>, vector<1x1x128xf32>
    %7 = vector.shape_cast %6 : vector<1x1x128xf32> to vector<1x128xf32>
    %cst = arith.constant dense<0.000000e+00> : vector<16xf32>
    %8 = vector.multi_reduction <add>, %3, %cst [1] : vector<16x128xf32> to vector<16xf32>
    %9 = vector.shape_cast %8 : vector<16xf32> to vector<16x1xf32>
    %cst_8 = arith.constant 1.280000e+02 : f32
    %10 = vector.broadcast %cst_8 : f32 to vector<16x1xf32>
    %11 = arith.divf %9, %10 : vector<16x1xf32>
    %12 = vector.broadcast %11 : vector<16x1xf32> to vector<16x128xf32>
    %13 = arith.subf %3, %12 : vector<16x128xf32>
    %14 = arith.mulf %13, %13 : vector<16x128xf32>
    %cst_9 = arith.constant dense<0.000000e+00> : vector<16xf32>
    %15 = vector.multi_reduction <add>, %14, %cst_9 [1] : vector<16x128xf32> to vector<16xf32>
    %16 = vector.shape_cast %15 : vector<16xf32> to vector<16x1xf32>
    %cst_10 = arith.constant 1.280000e+02 : f32
    %17 = vector.broadcast %cst_10 : f32 to vector<16x1xf32>
    %18 = arith.divf %16, %17 : vector<16x1xf32>
    %19 = vector.broadcast %11 : vector<16x1xf32> to vector<16x128xf32>
    %20 = arith.subf %3, %19 : vector<16x128xf32>
    %cst_11 = arith.constant 9.99999974E-6 : f32
    %21 = vector.broadcast %cst_11 : f32 to vector<16x1xf32>
    %22 = arith.addf %18, %21 : vector<16x1xf32>
    %23 = math.rsqrt %22 : vector<16x1xf32>
    %24 = vector.broadcast %23 : vector<16x1xf32> to vector<16x128xf32>
    %25 = arith.mulf %20, %24 : vector<16x128xf32>
    %26 = vector.broadcast %5 : vector<1x128xf32> to vector<16x128xf32>
    %27 = arith.mulf %25, %26 : vector<16x128xf32>
    %28 = vector.broadcast %7 : vector<1x128xf32> to vector<16x128xf32>
    %29 = arith.addf %27, %28 : vector<16x128xf32>
    %30 = arith.truncf %29 : vector<16x128xf32> to vector<16x128xbf16>
    %c0_12 = arith.constant 0 : index
    %c0_13 = arith.constant 0 : index
    %c0_14 = arith.constant 0 : index
    %31 = vector.load %arg5[%c0_12, %c0_13, %c0_14] : memref<1x128x384xbf16, #tpu.memory_space<vmem>>, vector<1x128x384xbf16>
    %32 = vector.shape_cast %31 : vector<1x128x384xbf16> to vector<128x384xbf16>
    %cst_15 = arith.constant dense<0.000000e+00> : vector<16x384xf32>
    %33 = tpu.matmul %30, %32, %cst_15 {dimension_numbers = #tpu.dot_dimension_numbers<[1], [0], [0], [1], [0, 0, 1, 1], [], []>} : vector<16x128xbf16>, vector<128x384xbf16>, vector<16x384xf32> -> vector<16x384xf32>
    %c0_16 = arith.constant 0 : index
    %c0_17 = arith.constant 0 : index
    %c0_18 = arith.constant 0 : index
    %34 = vector.load %arg6[%c0_16, %c0_17, %c0_18] : memref<1x1x384xf32, #tpu.memory_space<vmem>>, vector<1x1x384xf32>
    %35 = vector.shape_cast %34 : vector<1x1x384xf32> to vector<1x384xf32>
    %36 = vector.broadcast %35 : vector<1x384xf32> to vector<16x384xf32>
    %37 = arith.addf %33, %36 : vector<16x384xf32>
    %38 = vector.extract_strided_slice %37 {offsets = [0, 0], sizes = [16, 32], strides = [1, 1]} : vector<16x384xf32> to vector<16x32xf32>
    %39 = vector.extract_strided_slice %37 {offsets = [0, 32], sizes = [16, 32], strides = [1, 1]} : vector<16x384xf32> to vector<16x32xf32>
    %40 = vector.extract_strided_slice %37 {offsets = [0, 64], sizes = [16, 32], strides = [1, 1]} : vector<16x384xf32> to vector<16x32xf32>
    %41 = vector.extract_strided_slice %37 {offsets = [0, 96], sizes = [16, 32], strides = [1, 1]} : vector<16x384xf32> to vector<16x32xf32>
    %42 = vector.shape_cast %38 : vector<16x32xf32> to vector<1x16x32xf32>
    %43 = vector.shape_cast %39 : vector<16x32xf32> to vector<1x16x32xf32>
    %44 = vector.shape_cast %40 : vector<16x32xf32> to vector<1x16x32xf32>
    %45 = vector.shape_cast %41 : vector<16x32xf32> to vector<1x16x32xf32>
    %46 = tpu.concatenate %42, %43, %44, %45 in 0 : vector<1x16x32xf32>, vector<1x16x32xf32>, vector<1x16x32xf32>, vector<1x16x32xf32> -> vector<4x16x32xf32>
    %47 = arith.truncf %46 : vector<4x16x32xf32> to vector<4x16x32xbf16>
    %48 = vector.extract_strided_slice %37 {offsets = [0, 128], sizes = [16, 32], strides = [1, 1]} : vector<16x384xf32> to vector<16x32xf32>
    %49 = vector.extract_strided_slice %37 {offsets = [0, 160], sizes = [16, 32], strides = [1, 1]} : vector<16x384xf32> to vector<16x32xf32>
    %50 = vector.extract_strided_slice %37 {offsets = [0, 192], sizes = [16, 32], strides = [1, 1]} : vector<16x384xf32> to vector<16x32xf32>
    %51 = vector.extract_strided_slice %37 {offsets = [0, 224], sizes = [16, 32], strides = [1, 1]} : vector<16x384xf32> to vector<16x32xf32>
    %52 = vector.shape_cast %48 : vector<16x32xf32> to vector<1x16x32xf32>
    %53 = vector.shape_cast %49 : vector<16x32xf32> to vector<1x16x32xf32>
    %54 = vector.shape_cast %50 : vector<16x32xf32> to vector<1x16x32xf32>
    %55 = vector.shape_cast %51 : vector<16x32xf32> to vector<1x16x32xf32>
    %56 = tpu.concatenate %52, %53, %54, %55 in 0 : vector<1x16x32xf32>, vector<1x16x32xf32>, vector<1x16x32xf32>, vector<1x16x32xf32> -> vector<4x16x32xf32>
    %57 = arith.truncf %56 : vector<4x16x32xf32> to vector<4x16x32xbf16>
    %58 = vector.extract_strided_slice %37 {offsets = [0, 256], sizes = [16, 32], strides = [1, 1]} : vector<16x384xf32> to vector<16x32xf32>
    %59 = vector.extract_strided_slice %37 {offsets = [0, 288], sizes = [16, 32], strides = [1, 1]} : vector<16x384xf32> to vector<16x32xf32>
    %60 = vector.extract_strided_slice %37 {offsets = [0, 320], sizes = [16, 32], strides = [1, 1]} : vector<16x384xf32> to vector<16x32xf32>
    %61 = vector.extract_strided_slice %37 {offsets = [0, 352], sizes = [16, 32], strides = [1, 1]} : vector<16x384xf32> to vector<16x32xf32>
    %62 = vector.shape_cast %58 : vector<16x32xf32> to vector<1x16x32xf32>
    %63 = vector.shape_cast %59 : vector<16x32xf32> to vector<1x16x32xf32>
    %64 = vector.shape_cast %60 : vector<16x32xf32> to vector<1x16x32xf32>
    %65 = vector.shape_cast %61 : vector<16x32xf32> to vector<1x16x32xf32>
    %66 = tpu.concatenate %62, %63, %64, %65 in 0 : vector<1x16x32xf32>, vector<1x16x32xf32>, vector<1x16x32xf32>, vector<1x16x32xf32> -> vector<4x16x32xf32>
    %67 = arith.truncf %66 : vector<4x16x32xf32> to vector<4x16x32xbf16>
    "tpu.trace_start"() <{level = 10 : i32, message = "hqd,hkd->hqk"}> : () -> ()
    %cst_19 = arith.constant dense<0.000000e+00> : vector<4x16x16xf32>
    %68 = tpu.matmul %47, %57, %cst_19 {dimension_numbers = #tpu.dot_dimension_numbers<[2], [2], [1], [1], [0, 0, 0, 1, 1, 1], [0], [0]>} : vector<4x16x32xbf16>, vector<4x16x32xbf16>, vector<4x16x16xf32> -> vector<4x16x16xf32>
    "tpu.trace_stop"() : () -> ()
    %cst_20 = arith.constant 0.176776692 : f32
    %69 = vector.broadcast %cst_20 : f32 to vector<4x16x16xf32>
    %70 = arith.mulf %68, %69 : vector<4x16x16xf32>
    %cst_21 = arith.constant dense<0xFF800000> : vector<4x16xf32>
    %71 = vector.multi_reduction <maximumf>, %70, %cst_21 [2] : vector<4x16x16xf32> to vector<4x16xf32>
    %72 = vector.shape_cast %71 : vector<4x16xf32> to vector<4x16x1xf32>
    %73 = vector.broadcast %72 : vector<4x16x1xf32> to vector<4x16x16xf32>
    %74 = arith.subf %70, %73 : vector<4x16x16xf32>
    %75 = math.exp %74 : vector<4x16x16xf32>
    %cst_22 = arith.constant dense<0.000000e+00> : vector<4x16xf32>
    %76 = vector.multi_reduction <add>, %75, %cst_22 [2] : vector<4x16x16xf32> to vector<4x16xf32>
    %77 = vector.shape_cast %76 : vector<4x16xf32> to vector<4x16x1xf32>
    %78 = tpu.reciprocal %77 {approx = true} : vector<4x16x1xf32> -> vector<4x16x1xf32>
    %79 = vector.broadcast %78 : vector<4x16x1xf32> to vector<4x16x16xf32>
    %80 = arith.mulf %75, %79 : vector<4x16x16xf32>
    %81 = arith.truncf %80 : vector<4x16x16xf32> to vector<4x16x16xbf16>
    "tpu.trace_start"() <{level = 10 : i32, message = "hqk,hkd->hqd"}> : () -> ()
    %cst_23 = arith.constant dense<0.000000e+00> : vector<4x16x32xf32>
    %82 = tpu.matmul %81, %67, %cst_23 {dimension_numbers = #tpu.dot_dimension_numbers<[2], [1], [1], [2], [0, 0, 0, 1, 1, 2], [0], [0]>} : vector<4x16x16xbf16>, vector<4x16x32xbf16>, vector<4x16x32xf32> -> vector<4x16x32xf32>
    "tpu.trace_stop"() : () -> ()
    %83 = vector.extract_strided_slice %82 {offsets = [0, 0, 0], sizes = [1, 16, 32], strides = [1, 1, 1]} : vector<4x16x32xf32> to vector<1x16x32xf32>
    %84 = vector.shape_cast %83 : vector<1x16x32xf32> to vector<16x32xf32>
    %85 = vector.extract_strided_slice %82 {offsets = [1, 0, 0], sizes = [1, 16, 32], strides = [1, 1, 1]} : vector<4x16x32xf32> to vector<1x16x32xf32>
    %86 = vector.shape_cast %85 : vector<1x16x32xf32> to vector<16x32xf32>
    %87 = vector.extract_strided_slice %82 {offsets = [2, 0, 0], sizes = [1, 16, 32], strides = [1, 1, 1]} : vector<4x16x32xf32> to vector<1x16x32xf32>
    %88 = vector.shape_cast %87 : vector<1x16x32xf32> to vector<16x32xf32>
    %89 = vector.extract_strided_slice %82 {offsets = [3, 0, 0], sizes = [1, 16, 32], strides = [1, 1, 1]} : vector<4x16x32xf32> to vector<1x16x32xf32>
    %90 = vector.shape_cast %89 : vector<1x16x32xf32> to vector<16x32xf32>
    %91 = tpu.concatenate %84, %86, %88, %90 in 1 : vector<16x32xf32>, vector<16x32xf32>, vector<16x32xf32>, vector<16x32xf32> -> vector<16x128xf32>
    %92 = arith.truncf %91 : vector<16x128xf32> to vector<16x128xbf16>
    %c0_24 = arith.constant 0 : index
    %c0_25 = arith.constant 0 : index
    %c0_26 = arith.constant 0 : index
    %93 = vector.load %arg7[%c0_24, %c0_25, %c0_26] : memref<1x128x128xbf16, #tpu.memory_space<vmem>>, vector<1x128x128xbf16>
    %94 = vector.shape_cast %93 : vector<1x128x128xbf16> to vector<128x128xbf16>
    %cst_27 = arith.constant dense<0.000000e+00> : vector<16x128xf32>
    %95 = tpu.matmul %92, %94, %cst_27 {dimension_numbers = #tpu.dot_dimension_numbers<[1], [0], [0], [1], [0, 0, 1, 1], [], []>} : vector<16x128xbf16>, vector<128x128xbf16>, vector<16x128xf32> -> vector<16x128xf32>
    %c0_28 = arith.constant 0 : index
    %c0_29 = arith.constant 0 : index
    %c0_30 = arith.constant 0 : index
    %96 = vector.load %arg8[%c0_28, %c0_29, %c0_30] : memref<1x1x128xf32, #tpu.memory_space<vmem>>, vector<1x1x128xf32>
    %97 = vector.shape_cast %96 : vector<1x1x128xf32> to vector<1x128xf32>
    %98 = vector.broadcast %97 : vector<1x128xf32> to vector<16x128xf32>
    %99 = arith.addf %95, %98 : vector<16x128xf32>
    %100 = arith.addf %3, %99 : vector<16x128xf32>
    %c0_31 = arith.constant 0 : index
    %c0_32 = arith.constant 0 : index
    %c0_33 = arith.constant 0 : index
    %101 = vector.load %arg9[%c0_31, %c0_32, %c0_33] : memref<1x1x128xf32, #tpu.memory_space<vmem>>, vector<1x1x128xf32>
    %102 = vector.shape_cast %101 : vector<1x1x128xf32> to vector<1x128xf32>
    %c0_34 = arith.constant 0 : index
    %c0_35 = arith.constant 0 : index
    %c0_36 = arith.constant 0 : index
    %103 = vector.load %arg10[%c0_34, %c0_35, %c0_36] : memref<1x1x128xf32, #tpu.memory_space<vmem>>, vector<1x1x128xf32>
    %104 = vector.shape_cast %103 : vector<1x1x128xf32> to vector<1x128xf32>
    %cst_37 = arith.constant dense<0.000000e+00> : vector<16xf32>
    %105 = vector.multi_reduction <add>, %100, %cst_37 [1] : vector<16x128xf32> to vector<16xf32>
    %106 = vector.shape_cast %105 : vector<16xf32> to vector<16x1xf32>
    %cst_38 = arith.constant 1.280000e+02 : f32
    %107 = vector.broadcast %cst_38 : f32 to vector<16x1xf32>
    %108 = arith.divf %106, %107 : vector<16x1xf32>
    %109 = vector.broadcast %108 : vector<16x1xf32> to vector<16x128xf32>
    %110 = arith.subf %100, %109 : vector<16x128xf32>
    %111 = arith.mulf %110, %110 : vector<16x128xf32>
    %cst_39 = arith.constant dense<0.000000e+00> : vector<16xf32>
    %112 = vector.multi_reduction <add>, %111, %cst_39 [1] : vector<16x128xf32> to vector<16xf32>
    %113 = vector.shape_cast %112 : vector<16xf32> to vector<16x1xf32>
    %cst_40 = arith.constant 1.280000e+02 : f32
    %114 = vector.broadcast %cst_40 : f32 to vector<16x1xf32>
    %115 = arith.divf %113, %114 : vector<16x1xf32>
    %116 = vector.broadcast %108 : vector<16x1xf32> to vector<16x128xf32>
    %117 = arith.subf %100, %116 : vector<16x128xf32>
    %cst_41 = arith.constant 9.99999974E-6 : f32
    %118 = vector.broadcast %cst_41 : f32 to vector<16x1xf32>
    %119 = arith.addf %115, %118 : vector<16x1xf32>
    %120 = math.rsqrt %119 : vector<16x1xf32>
    %121 = vector.broadcast %120 : vector<16x1xf32> to vector<16x128xf32>
    %122 = arith.mulf %117, %121 : vector<16x128xf32>
    %123 = vector.broadcast %102 : vector<1x128xf32> to vector<16x128xf32>
    %124 = arith.mulf %122, %123 : vector<16x128xf32>
    %125 = vector.broadcast %104 : vector<1x128xf32> to vector<16x128xf32>
    %126 = arith.addf %124, %125 : vector<16x128xf32>
    %127 = arith.truncf %126 : vector<16x128xf32> to vector<16x128xbf16>
    %c0_42 = arith.constant 0 : index
    %c0_43 = arith.constant 0 : index
    %c0_44 = arith.constant 0 : index
    %128 = vector.load %arg11[%c0_42, %c0_43, %c0_44] : memref<1x128x512xbf16, #tpu.memory_space<vmem>>, vector<1x128x512xbf16>
    %129 = vector.shape_cast %128 : vector<1x128x512xbf16> to vector<128x512xbf16>
    %cst_45 = arith.constant dense<0.000000e+00> : vector<16x512xf32>
    %130 = tpu.matmul %127, %129, %cst_45 {dimension_numbers = #tpu.dot_dimension_numbers<[1], [0], [0], [1], [0, 0, 1, 1], [], []>} : vector<16x128xbf16>, vector<128x512xbf16>, vector<16x512xf32> -> vector<16x512xf32>
    %c0_46 = arith.constant 0 : index
    %c0_47 = arith.constant 0 : index
    %c0_48 = arith.constant 0 : index
    %131 = vector.load %arg12[%c0_46, %c0_47, %c0_48] : memref<1x1x512xf32, #tpu.memory_space<vmem>>, vector<1x1x512xf32>
    %132 = vector.shape_cast %131 : vector<1x1x512xf32> to vector<1x512xf32>
    %133 = vector.broadcast %132 : vector<1x512xf32> to vector<16x512xf32>
    %134 = arith.addf %130, %133 : vector<16x512xf32>
    %cst_49 = arith.constant 5.000000e-01 : f32
    %135 = vector.broadcast %cst_49 : f32 to vector<16x512xf32>
    %136 = arith.mulf %135, %134 : vector<16x512xf32>
    %cst_50 = arith.constant 0.707106769 : f32
    %137 = vector.broadcast %cst_50 : f32 to vector<16x512xf32>
    %138 = arith.mulf %134, %137 : vector<16x512xf32>
    %139 = math.erf %138 : vector<16x512xf32>
    %cst_51 = arith.constant 1.000000e+00 : f32
    %140 = vector.broadcast %cst_51 : f32 to vector<16x512xf32>
    %141 = arith.addf %140, %139 : vector<16x512xf32>
    %142 = arith.mulf %136, %141 : vector<16x512xf32>
    %143 = arith.truncf %142 : vector<16x512xf32> to vector<16x512xbf16>
    %c0_52 = arith.constant 0 : index
    %c0_53 = arith.constant 0 : index
    %c0_54 = arith.constant 0 : index
    %144 = vector.load %arg13[%c0_52, %c0_53, %c0_54] : memref<1x512x128xbf16, #tpu.memory_space<vmem>>, vector<1x512x128xbf16>
    %145 = vector.shape_cast %144 : vector<1x512x128xbf16> to vector<512x128xbf16>
    %cst_55 = arith.constant dense<0.000000e+00> : vector<16x128xf32>
    %146 = tpu.matmul %143, %145, %cst_55 {dimension_numbers = #tpu.dot_dimension_numbers<[1], [0], [0], [1], [0, 0, 1, 1], [], []>} : vector<16x512xbf16>, vector<512x128xbf16>, vector<16x128xf32> -> vector<16x128xf32>
    %c0_56 = arith.constant 0 : index
    %c0_57 = arith.constant 0 : index
    %c0_58 = arith.constant 0 : index
    %147 = vector.load %arg14[%c0_56, %c0_57, %c0_58] : memref<1x1x128xf32, #tpu.memory_space<vmem>>, vector<1x1x128xf32>
    %148 = vector.shape_cast %147 : vector<1x1x128xf32> to vector<1x128xf32>
    %149 = vector.broadcast %148 : vector<1x128xf32> to vector<16x128xf32>
    %150 = arith.addf %146, %149 : vector<16x128xf32>
    %151 = arith.addf %100, %150 : vector<16x128xf32>
    %c0_59 = arith.constant 0 : index
    %c0_60 = arith.constant 0 : index
    %152 = vector.load %arg18[%c0_59, %c0_60] : memref<16x128xf32, #tpu.memory_space<vmem>>, vector<16x128xf32>
    tpu.vector_store %arg18[%c0_59, %c0_60], %151 {strides = array<i32>} : memref<16x128xf32, #tpu.memory_space<vmem>>, vector<16x128xf32>,
    %c1_i32 = arith.constant 1 : i32
    %153 = arith.cmpi eq, %arg1, %c1_i32 : i32
    %154 = arith.extui %153 : i1 to i32
    %c0_i32_61 = arith.constant 0 : i32
    %155 = arith.cmpi ne, %154, %c0_i32_61 : i32
    scf.if %155 {
      %c0_62 = arith.constant 0 : index
      %c0_63 = arith.constant 0 : index
      %156 = vector.load %arg15[%c0_62, %c0_63] : memref<1x128xf32, #tpu.memory_space<vmem>>, vector<1x128xf32>
      %c0_64 = arith.constant 0 : index
      %c0_65 = arith.constant 0 : index
      %157 = vector.load %arg16[%c0_64, %c0_65] : memref<1x128xf32, #tpu.memory_space<vmem>>, vector<1x128xf32>
      %cst_66 = arith.constant dense<0.000000e+00> : vector<16xf32>
      %158 = vector.multi_reduction <add>, %151, %cst_66 [1] : vector<16x128xf32> to vector<16xf32>
      %159 = vector.shape_cast %158 : vector<16xf32> to vector<16x1xf32>
      %cst_67 = arith.constant 1.280000e+02 : f32
      %160 = vector.broadcast %cst_67 : f32 to vector<16x1xf32>
      %161 = arith.divf %159, %160 : vector<16x1xf32>
      %162 = vector.broadcast %161 : vector<16x1xf32> to vector<16x128xf32>
      %163 = arith.subf %151, %162 : vector<16x128xf32>
      %164 = arith.mulf %163, %163 : vector<16x128xf32>
      %cst_68 = arith.constant dense<0.000000e+00> : vector<16xf32>
      %165 = vector.multi_reduction <add>, %164, %cst_68 [1] : vector<16x128xf32> to vector<16xf32>
      %166 = vector.shape_cast %165 : vector<16xf32> to vector<16x1xf32>
      %cst_69 = arith.constant 1.280000e+02 : f32
      %167 = vector.broadcast %cst_69 : f32 to vector<16x1xf32>
      %168 = arith.divf %166, %167 : vector<16x1xf32>
      %169 = vector.broadcast %161 : vector<16x1xf32> to vector<16x128xf32>
      %170 = arith.subf %151, %169 : vector<16x128xf32>
      %cst_70 = arith.constant 9.99999974E-6 : f32
      %171 = vector.broadcast %cst_70 : f32 to vector<16x1xf32>
      %172 = arith.addf %168, %171 : vector<16x1xf32>
      %173 = math.rsqrt %172 : vector<16x1xf32>
      %174 = vector.broadcast %173 : vector<16x1xf32> to vector<16x128xf32>
      %175 = arith.mulf %170, %174 : vector<16x128xf32>
      %176 = vector.broadcast %156 : vector<1x128xf32> to vector<16x128xf32>
      %177 = arith.mulf %175, %176 : vector<16x128xf32>
      %178 = vector.broadcast %157 : vector<1x128xf32> to vector<16x128xf32>
      %179 = arith.addf %177, %178 : vector<16x128xf32>
      %c0_71 = arith.constant 0 : index
      %c0_72 = arith.constant 0 : index
      %c0_73 = arith.constant 0 : index
      %180 = vector.load %arg17[%c0_71, %c0_72, %c0_73] : memref<1x16x128xf32, #tpu.memory_space<vmem>>, vector<1x16x128xf32>
      %181 = vector.shape_cast %180 : vector<1x16x128xf32> to vector<16x128xf32>
      %182 = vector.shape_cast %179 : vector<16x128xf32> to vector<1x16x128xf32>
      tpu.vector_store %arg17[%c0_71, %c0_72, %c0_73], %182 {strides = array<i32>} : memref<1x16x128xf32, #tpu.memory_space<vmem>>, vector<1x16x128xf32>,
    } else {
    }
    return
  }
  func.func @transform_0(%arg0: i32, %arg1: i32) -> (i32, i32, i32) {
    %c0_i32 = arith.constant 0 : i32
    %c0_i32_0 = arith.constant 0 : i32
    %c0_i32_1 = arith.constant 0 : i32
    return %arg0, %c0_i32, %c0_i32_0 : i32, i32, i32
  }
  func.func @transform_1(%arg0: i32, %arg1: i32) -> (i32, i32, i32) {
    %c0_i32 = arith.constant 0 : i32
    %c0_i32_0 = arith.constant 0 : i32
    %c0_i32_1 = arith.constant 0 : i32
    return %arg1, %c0_i32, %c0_i32_0 : i32, i32, i32
  }
  func.func @transform_2(%arg0: i32, %arg1: i32) -> (i32, i32, i32) {
    %c0_i32 = arith.constant 0 : i32
    %c0_i32_0 = arith.constant 0 : i32
    %c0_i32_1 = arith.constant 0 : i32
    return %arg1, %c0_i32, %c0_i32_0 : i32, i32, i32
  }
  func.func @transform_3(%arg0: i32, %arg1: i32) -> (i32, i32, i32) {
    %c0_i32 = arith.constant 0 : i32
    %c0_i32_0 = arith.constant 0 : i32
    %c0_i32_1 = arith.constant 0 : i32
    return %arg1, %c0_i32, %c0_i32_0 : i32, i32, i32
  }
  func.func @transform_4(%arg0: i32, %arg1: i32) -> (i32, i32, i32) {
    %c0_i32 = arith.constant 0 : i32
    %c0_i32_0 = arith.constant 0 : i32
    %c0_i32_1 = arith.constant 0 : i32
    return %arg1, %c0_i32, %c0_i32_0 : i32, i32, i32
  }
  func.func @transform_5(%arg0: i32, %arg1: i32) -> (i32, i32, i32) {
    %c0_i32 = arith.constant 0 : i32
    %c0_i32_0 = arith.constant 0 : i32
    %c0_i32_1 = arith.constant 0 : i32
    return %arg1, %c0_i32, %c0_i32_0 : i32, i32, i32
  }
  func.func @transform_6(%arg0: i32, %arg1: i32) -> (i32, i32, i32) {
    %c0_i32 = arith.constant 0 : i32
    %c0_i32_0 = arith.constant 0 : i32
    %c0_i32_1 = arith.constant 0 : i32
    return %arg1, %c0_i32, %c0_i32_0 : i32, i32, i32
  }
  func.func @transform_7(%arg0: i32, %arg1: i32) -> (i32, i32, i32) {
    %c0_i32 = arith.constant 0 : i32
    %c0_i32_0 = arith.constant 0 : i32
    %c0_i32_1 = arith.constant 0 : i32
    return %arg1, %c0_i32, %c0_i32_0 : i32, i32, i32
  }
  func.func @transform_8(%arg0: i32, %arg1: i32) -> (i32, i32, i32) {
    %c0_i32 = arith.constant 0 : i32
    %c0_i32_0 = arith.constant 0 : i32
    %c0_i32_1 = arith.constant 0 : i32
    return %arg1, %c0_i32, %c0_i32_0 : i32, i32, i32
  }
  func.func @transform_9(%arg0: i32, %arg1: i32) -> (i32, i32, i32) {
    %c0_i32 = arith.constant 0 : i32
    %c0_i32_0 = arith.constant 0 : i32
    %c0_i32_1 = arith.constant 0 : i32
    return %arg1, %c0_i32, %c0_i32_0 : i32, i32, i32
  }
  func.func @transform_10(%arg0: i32, %arg1: i32) -> (i32, i32, i32) {
    %c0_i32 = arith.constant 0 : i32
    %c0_i32_0 = arith.constant 0 : i32
    %c0_i32_1 = arith.constant 0 : i32
    return %arg1, %c0_i32, %c0_i32_0 : i32, i32, i32
  }
  func.func @transform_11(%arg0: i32, %arg1: i32) -> (i32, i32, i32) {
    %c0_i32 = arith.constant 0 : i32
    %c0_i32_0 = arith.constant 0 : i32
    %c0_i32_1 = arith.constant 0 : i32
    return %arg1, %c0_i32, %c0_i32_0 : i32, i32, i32
  }
  func.func @transform_12(%arg0: i32, %arg1: i32) -> (i32, i32, i32) {
    %c0_i32 = arith.constant 0 : i32
    %c0_i32_0 = arith.constant 0 : i32
    %c0_i32_1 = arith.constant 0 : i32
    return %arg1, %c0_i32, %c0_i32_0 : i32, i32, i32
  }
  func.func @transform_13(%arg0: i32, %arg1: i32) -> (i32, i32) {
    %c0_i32 = arith.constant 0 : i32
    %c0_i32_0 = arith.constant 0 : i32
    %c0_i32_1 = arith.constant 0 : i32
    return %c0_i32, %c0_i32_0 : i32, i32
  }
  func.func @transform_14(%arg0: i32, %arg1: i32) -> (i32, i32) {
    %c0_i32 = arith.constant 0 : i32
    %c0_i32_0 = arith.constant 0 : i32
    %c0_i32_1 = arith.constant 0 : i32
    return %c0_i32, %c0_i32_0 : i32, i32
  }
  func.func @transform_15(%arg0: i32, %arg1: i32) -> (i32, i32, i32) {
    %c0_i32 = arith.constant 0 : i32
    %c0_i32_0 = arith.constant 0 : i32
    %c0_i32_1 = arith.constant 0 : i32
    return %arg0, %c0_i32, %c0_i32_0 : i32, i32, i32
  }
}

</mosaic_0001>

<bundles_post_ra>
// kernel: transformer_forward.1
= control target key start
LH: loop header
LB: loop body
LE: loop exit
PB: predicated region body
PF: predicated region fallthrough
CT: control target
= control target key end

     0   :  { %s4996_s0 = inlined_call_operand.hbm [shape: f32[2,16,128], index: 0, kind: input, shape index: {}]   ;;  %s4997_s1 = inlined_call_operand.vmem [shape: f32[2,1,128], index: 1, kind: input, shape index: {}]   ;;  %s4998_s2 = inlined_call_operand.hbm [shape: f32[2,1,128], index: 2, kind: input, shape index: {}]   ;;  %s4999_s3 = inlined_call_operand.hbm [shape: bf16[2,128,384], index: 3, kind: input, shape index: {}]   ;;  %s5000_s4 = inlined_call_operand.vmem [shape: f32[2,1,384], index: 4, kind: input, shape index: {}]   ;;  %s5001_s5 = inlined_call_operand.hbm [shape: bf16[2,128,128], index: 5, kind: input, shape index: {}]   ;;  %s5002_s6 = inlined_call_operand.vmem [shape: f32[2,1,128], index: 6, kind: input, shape index: {}]   ;;  %s5003_s7 = inlined_call_operand.vmem [shape: f32[2,1,128], index: 7, kind: input, shape index: {}]   ;;  %s5004_s8 = inlined_call_operand.hbm [shape: f32[2,1,128], index: 8, kind: input, shape index: {}]   ;;  %s5005_s9 = inlined_call_operand.hbm [shape: bf16[2,128,512], index: 9, kind: input, shape index: {}]   ;;  %s5006_s10 = inlined_call_operand.vmem [shape: f32[2,1,512], index: 10, kind: input, shape index: {}]   ;;  %s5007_s11 = inlined_call_operand.hbm [shape: bf16[2,512,128], index: 11, kind: input, shape index: {}]   ;;  %s5008_s12 = inlined_call_operand.hbm [shape: f32[2,1,128], index: 12, kind: input, shape index: {}]   ;;  %s5009_s13 = inlined_call_operand.vmem [shape: f32[1,128], index: 13, kind: input, shape index: {}]   ;;  %s5010_s14 = inlined_call_operand.vmem [shape: f32[1,128], index: 14, kind: input, shape index: {}]   ;;  %s5011_s15 = inlined_call_operand.hbm [shape: f32[2,16,128], index: 15, kind: output, shape index: {}]  }
   0x1   :  { %5044 = sst [smem:[#allocation40_spill]] %s4996_s0 }
   0x2   :  { %5045 = sst [smem:[#allocation41_spill]] %s4997_s1 }
   0x3   :  { %5046 = sst [smem:[#allocation42_spill]] %s4998_s2 }
   0x4   :  { %5047 = sst [smem:[#allocation43_spill]] %s4999_s3 }
   0x5   :  { %5048 = sst [smem:[#allocation44_spill]] %s5000_s4 }
   0x6   :  { %5049 = sst [smem:[#allocation45_spill]] %s5001_s5 }
   0x7   :  { %5050 = sst [smem:[#allocation46_spill]] %s5002_s6 }
   0x8   :  { %5051 = sst [smem:[#allocation47_spill]] %s5003_s7 }
   0x9   :  { %5052 = sst [smem:[#allocation48_spill]] %s5004_s8 }
   0xa   :  { %5053 = sst [smem:[#allocation49_spill]] %s5005_s9 }
   0xb   :  { %5054 = sst [smem:[#allocation50_spill]] %s5006_s10 }
   0xc   :  { %5055 = sst [smem:[#allocation51_spill]] %s5007_s11 }
   0xd   :  { %5056 = sst [smem:[#allocation52_spill]] %s5008_s12 }
   0xe   :  { %5057 = sst [smem:[#allocation53_spill]] %s5009_s13 }
   0xf   :  { %5058 = sst [smem:[#allocation54_spill]] %s5010_s14 }
  0x10   :  { %5059 = sst [smem:[#allocation55_spill]] %s5011_s15 }
  0x11   :  { %20 = vsyncpa [#allocation4], 0 }
  0x12   :  { %22 = vsyncpa [#allocation4 + $0x1], 0 }
  0x13   :  { %23 = vsyncpa [#allocation7], 0 }
  0x14   :  { %25 = vsyncpa [#allocation7 + $0x1], 0 }
  0x15   :  { %26 = vsyncpa [#allocation10], 0 }
  0x16   :  { %28 = vsyncpa [#allocation10 + $0x1], 0 }
  0x17   :  { %29 = vsyncpa [#allocation13], 0 }
  0x18   :  { %31 = vsyncpa [#allocation13 + $0x1], 0 }
  0x19   :  { %32 = vsyncpa [#allocation16], 0 }
  0x1a   :  { %34 = vsyncpa [#allocation16 + $0x1], 0 }
  0x1b   :  { %35 = vsyncpa [#allocation5], 0 }
  0x1c   :  { %37 = vsyncpa [#allocation5 + $0x1], 0  ;;  %s4126_s18 = smov 0   ;;  %s4128_s19 = smov 0  }
  0x1d   :  { %s4130_s20 = smov 0   ;;  %s4132_s21 = smov 0  }
  0x1e   :  { %s4134_s22 = smov 0   ;;  %s4136_s23 = smov 0  }
  0x1f   :  { %s4138_s24 = smov 0   ;;  %s4140_s25 = smov 0  }
  0x20   :  { %s4142_s26 = smov 0   ;;  %s4144_s27 = smov 0  }
  0x21   :  { %s4146_s28 = smov 0  }
  0x22 LB: > { %5060 = sst [smem:[#allocation24_spill]] %s3983_s19  ;;  %p5015_p0 = scmp.eq.s32.totalorder %s4019_s28, 0  ;;  %s4019_s28 = sphi %s4146_s28, %s43_s28   ;;  %s4015_s27 = sphi %s4144_s27, %s5144_s27   ;;  %s4011_s26 = sphi %s4142_s26, %s5143_s26   ;;  %s4007_s25 = sphi %s4140_s25, %s5142_s25   ;;  %s4003_s24 = sphi %s4138_s24, %s5141_s24   ;;  %s3999_s23 = sphi %s4136_s23, %s5140_s23   ;;  %s3995_s22 = sphi %s4134_s22, %s5139_s22   ;;  %s3991_s21 = sphi %s4132_s21, %s5138_s21   ;;  %s3987_s20 = sphi %s4130_s20, %s5137_s20   ;;  %s3983_s19 = sphi %s4128_s19, %s5136_s19   ;;  %s3979_s18 = sphi %s4126_s18, %s5135_s18  }
  0x23   : > { %5061 = sst [smem:[#allocation25_spill]] %s3987_s20  ;;  %p121_p1 = scmp.ne.s32.totalorder %s3987_s20, %s3983_s19 }
  0x24   : > { %5062 = sst [smem:[#allocation26_spill]] %s3991_s21  ;;  %p5014_p3 = scmp.lt.s32.totalorder %s4019_s28, 4 }
  0x25   : > { %5063 = sst [smem:[#allocation27_spill]] %s3995_s22  ;;  %p123_p4 = por %p121_p1, %p5015_p0 }
  0x26   : > { %5064 = sst [smem:[#allocation28_spill]] %s3999_s23  ;;  %s4191_s30 = sand.u32 1, %s4019_s28  }
  0x27   : > { %5065 = sst [smem:[#allocation29_spill]] %s4003_s24  ;;  %s4194_s16 = sand.u32 1, %s3987_s20  }
  0x28   : > { %5066 = sst [smem:[#allocation30_spill]] %s4007_s25  ;;  %s4197_s17 = sshll.u32 %s4011_s26, 4 }
  0x29   : > { %5067 = sst [smem:[#allocation31_spill]] %s4011_s26  ;;  %s5070_s2 = sld [smem:[#allocation42_spill]] }
  0x2a   : > { %5068 = sst [smem:[#allocation32_spill]] %s4015_s27  ;;  %s515_s29 = scalar_lea.vmem [#allocation6], %s4194_s16 }
  0x2b   : > { %5069 = sst [smem:[#allocation33_spill]] %s4197_s17  ;;  %s522_s13 = sshll.u32 %s515_s29, 4  ;;  %s4206_s13 = int_to_ptr.vmem [resolvable:$true] %s522_s13 }
  0x2c   : > { %p4210_p5 = pnand %p5014_p3, %p123_p4 }
  0x2e   : > { %s5071_s10 = scalar_select %p4210_p5, 1, 0 }
  0x2f   : > { %s4203_s14 = scalar_lea.hbm %s5070_s2, %s4197_s17  ;;  %p4220_p8 = pneg %p4210_p5 }
  0x30   : > { %s3641_s7 = scalar_lea.hbm %s4203_s14, 16  ;;  %s3646_s6 = scalar_lea.hbm %s5070_s2, 32 }
  0x31   : > { %p3642_p7 = scmp.ne.s32.totalorder %s4203_s14, %s3641_s7  ;;  %p3647_p11 = scmp.lt.u32.totalorder %s4203_s14, %s5070_s2 }
  0x32   : > { %p3648_p12 = scmp.lt.u32.totalorder %s3646_s6, %s3641_s7  ;;  %p3650_p1 = scmp.lt.u32.totalorder %s3641_s7, %s4203_s14 }
  0x33   : > { %p3644_p9 = pnand %p4220_p8, %p3642_p7 }
  0x34   : > { %p3649_p13 = por %p3648_p12, %p3647_p11 }
  0x35   : > { %p3645_p10 = pneg %p3644_p9 }
  0x36   : > { %p3651_p4 = por %p3650_p1, %p3649_p13 }
  0x38   : > { %p3652_p3 = pnand %p3651_p4, %p3645_p10 }
  0x3a   : > { %3655 = shalt.err (!%p3652_p3)
}
  0x3b   : > { %s3656_s4 = scalar_lea.vmem %s4206_s13, 16  ;;  %s4021_s25 = smov [#allocation6]  }
  0x3c   : > { %p3657_p7 = scmp.ne.s32.totalorder %s4206_s13, %s3656_s4  ;;  %s3661_s29 = sshll.u32 %s4021_s25, 4  ;;  %s3662_s29 = int_to_ptr.vmem [resolvable:$false] %s3661_s29 }
  0x3d   : > { %s3663_s1 = scalar_lea.vmem %s3662_s29, 32  ;;  %p3664_p0 = scmp.lt.s32.totalorder %s4206_s13, %s3662_s29 }
  0x3e   : > { %p3659_p9 = pnand %p3657_p7, %p4220_p8  ;;  %p3665_p6 = scmp.lt.s32.totalorder %s3663_s1, %s3656_s4 }
  0x40   : > { %p3660_p2 = pneg %p3659_p9  ;;  %p3666_p11 = por %p3665_p6, %p3664_p0 }
  0x42   : > { %p3667_p12 = pnand %p3666_p11, %p3660_p2 }
  0x44   : > { %3670 = shalt.err (!%p3667_p12)
}
  0x45   : > { %s5073_s6 = scalar_lea.sflag [#allocation7], %s4191_s30  ;;  %p671_p3 = scmp.lt.s32.totalorder %s4019_s28, 5 }
  0x46   : > { %3270 = dma.hbm_to_vmem [thread:$0]  (!%p4210_p5), %s4203_s14, 16, %s4206_s13, %s5073_s6  }
  0x47   : > { %s2934_s7 = sshll.u32 %s4194_s16, 6  ;;  %s3072_s24 = sshll.u32 %s4011_s26, 10 }
  0x48   : > { %p5074_p10 = scmp.ge.s32.totalorder %s4019_s28, 1  ;;  %s5077_s5 = sld [smem:[#allocation45_spill]] }
  0x49   : > { %s561_s2 = scalar_lea.vmem [#allocation9], %s2934_s7  ;;  %s5023_s13 = scalar_lea.sflag [#allocation10], %s4191_s30 }
  0x4a   : > { %p4250_p0 = pnand %p5074_p10, %p671_p3  ;;  %s568_s12 = sshll.u32 %s561_s2, 4  ;;  %s4259_s12 = int_to_ptr.vmem [resolvable:$true] %s568_s12 }
  0x4c   : > { %s5075_s4 = scalar_select %p4250_p0, 1, 0 }
  0x4e   : > { %5076 = sst [smem:[#allocation34_spill]] %s5075_s4  ;;  %s4257_s1 = scalar_lea.hbm %s5077_s5, %s3072_s24 }
  0x4f   : > { %s3671_s14 = scalar_lea.hbm %s4257_s1, 1024  ;;  %s3676_s25 = scalar_lea.hbm %s5077_s5, 2048 }
  0x50   : > { %p3672_p2 = scmp.ne.s32.totalorder %s4257_s1, %s3671_s14  ;;  %p3677_p1 = scmp.lt.u32.totalorder %s4257_s1, %s5077_s5 }
  0x51   : > { %p3678_p4 = scmp.lt.u32.totalorder %s3676_s25, %s3671_s14  ;;  %p3680_p9 = scmp.lt.u32.totalorder %s3671_s14, %s4257_s1 }
  0x52   : > { %p3674_p6 = pnand %p3672_p2, %p4220_p8 }
  0x53   : > { %p3679_p7 = por %p3678_p4, %p3677_p1 }
  0x54   : > { %p3675_p13 = pneg %p3674_p6 }
  0x55   : > { %p3681_p11 = por %p3680_p9, %p3679_p7 }
  0x57   : > { %p3682_p12 = pnand %p3681_p11, %p3675_p13 }
  0x59   : > { %3685 = shalt.err (!%p3682_p12)
}
  0x5a   : > { %s3686_s2 = scalar_lea.vmem %s4259_s12, 1024  ;;  %s4022_s7 = smov [#allocation9]  }
  0x5b   : > { %p3687_p3 = scmp.ne.s32.totalorder %s4259_s12, %s3686_s2  ;;  %s3691_s4 = sshll.u32 %s4022_s7, 4  ;;  %s3692_s4 = int_to_ptr.vmem [resolvable:$false] %s3691_s4 }
  0x5c   : > { %s3693_s6 = scalar_lea.vmem %s3692_s4, 2048  ;;  %p3694_p6 = scmp.lt.s32.totalorder %s4259_s12, %s3692_s4 }
  0x5d   : > { %p3689_p10 = pnand %p3687_p3, %p4220_p8  ;;  %p3695_p0 = scmp.lt.s32.totalorder %s3693_s6, %s3686_s2 }
  0x5f   : > { %p3690_p2 = pneg %p3689_p10  ;;  %p3696_p1 = por %p3695_p0, %p3694_p6 }
  0x61   : > { %p3697_p4 = pnand %p3696_p1, %p3690_p2 }
  0x63   : > { %3700 = shalt.err (!%p3697_p4)
}
  0x64   : > { %s5021_s14 = smov 64   ;;  %s5022_s25 = smov 4  }
  0x65   : > { %3276 = dma.hbm_to_vmem [thread:$0]  (!%p4210_p5), %s4257_s1, 1024, %s4259_s12, %s5023_s13, %s5021_s14, %s5021_s14, %s5022_s25  }
  0x66   : > { %s2938_s24 = sshll.u32 %s4194_s16, 8  ;;  %s3073_s29 = sshll.u32 %s4011_s26, 12 }
  0x67   : > { %s5078_s9 = sld [smem:[#allocation49_spill]]  ;;  %s611_s6 = scalar_lea.vmem [#allocation12], %s2938_s24 }
  0x68   : > { %s618_s5 = sshll.u32 %s611_s6, 4  ;;  %s5024_s8 = scalar_lea.sflag [#allocation13], %s4191_s30  ;;  %s4299_s5 = int_to_ptr.vmem [resolvable:$true] %s618_s5 }
  0x6d   : > { %s4295_s4 = scalar_lea.hbm %s5078_s9, %s3073_s29  ;;  %s3706_s2 = scalar_lea.hbm %s5078_s9, 8192 }
  0x6e   : > { %s3701_s17 = scalar_lea.hbm %s4295_s4, 4096  ;;  %p3707_p9 = scmp.lt.u32.totalorder %s4295_s4, %s5078_s9 }
  0x6f   : > { %p3702_p0 = scmp.ne.s32.totalorder %s4295_s4, %s3701_s17  ;;  %p3708_p11 = scmp.lt.u32.totalorder %s3706_s2, %s3701_s17 }
  0x70   : > { %p3710_p3 = scmp.lt.u32.totalorder %s3701_s17, %s4295_s4 }
  0x71   : > { %p3704_p13 = pnand %p3702_p0, %p4220_p8  ;;  %p3709_p12 = por %p3708_p11, %p3707_p9 }
  0x73   : > { %p3705_p7 = pneg %p3704_p13  ;;  %p3711_p10 = por %p3710_p3, %p3709_p12 }
  0x75   : > { %p3712_p2 = pnand %p3711_p10, %p3705_p7 }
  0x77   : > { %3715 = shalt.err (!%p3712_p2)
}
  0x78   : > { %s3716_s6 = scalar_lea.vmem %s4299_s5, 4096  ;;  %s4025_s12 = smov [#allocation12]  }
  0x79   : > { %p3717_p6 = scmp.ne.s32.totalorder %s4299_s5, %s3716_s6  ;;  %s3721_s1 = sshll.u32 %s4025_s12, 4  ;;  %s3722_s1 = int_to_ptr.vmem [resolvable:$false] %s3721_s1 }
  0x7a   : > { %s3723_s14 = scalar_lea.vmem %s3722_s1, 8192  ;;  %p3724_p0 = scmp.lt.s32.totalorder %s4299_s5, %s3722_s1 }
  0x7b   : > { %p3719_p1 = pnand %p3717_p6, %p4220_p8  ;;  %p3725_p13 = scmp.lt.s32.totalorder %s3723_s14, %s3716_s6 }
  0x7d   : > { %p3720_p4 = pneg %p3719_p1  ;;  %p3726_p9 = por %p3725_p13, %p3724_p0 }
  0x7f   : > { %p3727_p11 = pnand %p3726_p9, %p3720_p4 }
  0x81   : > { %3730 = shalt.err (!%p3727_p11)
}
  0x82   : > { %s4026_s17 = smov 256   ;;  %s4027_s2 = smov 16  }
  0x83   : > { %3282 = dma.hbm_to_vmem [thread:$0]  (!%p4210_p5), %s4295_s4, 4096, %s4299_s5, %s5024_s8, %s4026_s17, %s4026_s17, %s4027_s2  }
  0x84   : > { %s5079_s11 = sld [smem:[#allocation51_spill]]  ;;  %s639_s1 = scalar_lea.vmem [#allocation14], %s2938_s24 }
  0x85   : > { %s646_s14 = sshll.u32 %s639_s1, 4  ;;  %s4337_s25 = sadd.s32 4294967295, %s4019_s28   ;;  %s4334_s14 = int_to_ptr.vmem [resolvable:$true] %s646_s14 }
  0x86   : > { %s2926_s13 = sadd.s32 4294967294, %s4019_s28   ;;  %s52_s5 = sadd.s32 1, %s4011_s26 }
  0x87   : > { %s55_s4 = sadd.s32 1, %s4015_s27  ;;  %p53_p7 = scmp.ge.s32.totalorder %s52_s5, 2 }
  0x88   : > { %p69_p12 = scmp.ne.s32.totalorder %s3999_s23, %s3995_s22  ;;  %p75_p3 = scmp.ne.s32.totalorder %s3995_s22, %s3991_s21 }
  0x89   : > { %s5146_s5 = smov (%p53_p7, %s52_s5), 0  ;;  %s5148_s4 = smov (!%p53_p7, %s55_s4), %s4015_s27 }
  0x8a   : > { %s4330_s12 = scalar_lea.hbm %s5079_s11, %s3073_s29  ;;  %s62_s29 = sadd.s32 1, %s3999_s23 }
  0x8b   : > { %5080 = sst [smem:[#allocation35_spill]] %s5146_s5  ;;  %p5081_p10 = scmp.eq.s32.totalorder %s4019_s28, 0 }
  0x8c   : > { %p76_p6 = scmp.eq.s32.totalorder %s4337_s25, 0  ;;  %p57_p1 = scmp.ge.s32.totalorder %s5148_s4, 2 }
  0x8d   : > { %p4355_p2 = por %p5081_p10, %p69_p12  ;;  %s111_s17 = ssub.s32 %s4011_s26, %s5146_s5 }
  0x8e   : > { %p4365_p4 = por %p76_p6, %p75_p3  ;;  %p112_p0 = scmp.eq.s32.totalorder %s111_s17, 0 }
  0x8f   : > { %s5150_s4 = smov (%p57_p1, %s5148_s4), 0  ;;  %s5085_s7 = sadd.s32 1, %s3987_s20 }
  0x90   : > { %s5083_s2 = scalar_select %p4365_p4, 1, 0 }
  0x91   : > { %5084 = sst [smem:[#allocation36_spill]] %s5150_s4  ;;  %s59_s1 = ssub.s32 %s4015_s27, %s5150_s4 }
  0x92   : > { %s4374_s6 = scalar_select %p112_p0, %s3987_s20, %s5085_s7  }
  0x93   : > { %p5087_p13 = scmp.ne.s32.totalorder %s3983_s19, %s3979_s18  ;;  %p60_p11 = scmp.eq.s32.totalorder %s59_s1, 0 }
  0x94   : > { %5086 = sst [smem:[#allocation37_spill]] %s4374_s6  ;;  %p453_p7 = scmp.eq.s32.totalorder %s4337_s25, 3 }
  0x95   : > { %p4381_p9 = por %p5087_p13, %p76_p6  ;;  %p459_p10 = scmp.eq.s32.totalorder %s2926_s13, 3 }
  0x96   : > { %s485_s9 = sand.u32 1, %s3999_s23   ;;  %p4393_p1 = por %p453_p7, %p69_p12 }
  0x97   : > { %s5088_s8 = scalar_select %p4381_p9, 1, 0 }
  0x98   : > { %s4388_s17 = scalar_select %p60_p11, %s3999_s23, %s62_s29  }
  0x99   : > { %s5090_s5 = scalar_select %p4393_p1, 1, 0 }
  0x9a   : > { %5089 = sst [smem:[#allocation38_spill]] %s4388_s17  ;;  %p4400_p0 = por %p459_p10, %p75_p3 }
  0x9b   : > { %s2929_s18 = sshll.u32 %s485_s9, 4  ;;  %s3071_s4 = sshll.u32 %s4015_s27, 8 }
  0x9c   : > { %s5091_s7 = scalar_select %p4400_p0, 1, 0 }
  0x9d   : > { %s5093_s0 = sld [smem:[#allocation40_spill]]  ;;  %s489_s13 = scalar_lea.vmem [#allocation3], %s2929_s18 }
  0x9e   : > { %5092 = sst [smem:[#allocation39_spill]] %s5091_s7  ;;  %s496_s29 = sshll.u32 %s489_s13, 4  ;;  %s4410_s29 = int_to_ptr.vmem [resolvable:$true] %s496_s29 }
  0x9f   : > { %p5094_p12 = scmp.lt.s32.totalorder %s4019_s28, 4  ;;  %s3242_s27 = smul.u32 192, %s4194_s16 }
  0xa0   : > { %s4421_s20 = scalar_lea.sflag [#allocation4], %s485_s9 }
  0xa1   : > { %p4416_p3 = pnand %p5094_p12, %p4355_p2 }
  0xa3   : > { %s4408_s1 = scalar_lea.hbm %s5093_s0, %s3071_s4  ;;  %p3733_p13 = pneg %p4416_p3 }
  0xa4   : > { %s3731_s4 = scalar_lea.hbm %s4408_s1, 256  ;;  %s3736_s18 = scalar_lea.hbm %s5093_s0, 512 }
  0xa5   : > { %p3732_p6 = scmp.ne.s32.totalorder %s4408_s1, %s3731_s4  ;;  %p3737_p2 = scmp.lt.u32.totalorder %s4408_s1, %s5093_s0 }
  0xa6   : > { %p3738_p10 = scmp.lt.u32.totalorder %s3736_s18, %s3731_s4  ;;  %p3740_p0 = scmp.lt.u32.totalorder %s3731_s4, %s4408_s1 }
  0xa7   : > { %p3734_p11 = pnand %p3733_p13, %p3732_p6 }
  0xa8   : > { %p3739_p12 = por %p3738_p10, %p3737_p2 }
  0xa9   : > { %p3735_p7 = pneg %p3734_p11 }
  0xaa   : > { %p3741_p1 = por %p3740_p0, %p3739_p12 }
  0xac   : > { %p3742_p9 = pnand %p3741_p1, %p3735_p7 }
  0xae   : > { %3745 = shalt.err (!%p3742_p9)
}
  0xaf   : > { %s3746_s9 = scalar_lea.vmem %s4410_s29, 256  ;;  %s4028_s6 = smov [#allocation3]  }
  0xb0   : > { %p3747_p6 = scmp.ne.s32.totalorder %s4410_s29, %s3746_s9  ;;  %s3751_s24 = sshll.u32 %s4028_s6, 4  ;;  %s3752_s24 = int_to_ptr.vmem [resolvable:$false] %s3751_s24 }
  0xb1   : > { %s3753_s23 = scalar_lea.vmem %s3752_s24, 512  ;;  %p3754_p5 = scmp.lt.s32.totalorder %s4410_s29, %s3752_s24 }
  0xb2   : > { %p3749_p11 = pnand %p3747_p6, %p3733_p13  ;;  %p3755_p2 = scmp.lt.s32.totalorder %s3753_s23, %s3746_s9 }
  0xb4   : > { %p3750_p4 = pneg %p3749_p11  ;;  %p3756_p10 = por %p3755_p2, %p3754_p5 }
  0xb6   : > { %p3757_p0 = pnand %p3756_p10, %p3750_p4 }
  0xb8   : > { %3760 = shalt.err (!%p3757_p0)
}
  0xb9   : > { %s4029_s4 = smov 128   ;;  %s4030_s18 = smov 8  }
  0xba   : > { %3267 = dma.hbm_to_vmem [thread:$0]  (!%p4416_p3), %s4408_s1, 256, %s4410_s29, %s4421_s20, %s4029_s4, %s4029_s4, %s4030_s18  }
  0xbb   : > { %s3243_s13 = smul.u32 3072, %s4011_s26  ;;  %s533_s6 = scalar_lea.vmem [#allocation8], %s3242_s27 }
  0xbc   : > { %s540_s0 = sshll.u32 %s533_s6, 4  ;;  %s5096_s3 = sld [smem:[#allocation43_spill]]  ;;  %s4457_s0 = int_to_ptr.vmem [resolvable:$true] %s540_s0 }
  0xc2   : > { %s4455_s23 = scalar_lea.hbm %s5096_s3, %s3243_s13  ;;  %s3766_s27 = scalar_lea.hbm %s5096_s3, 6144 }
  0xc3   : > { %s3761_s7 = scalar_lea.hbm %s4455_s23, 3072  ;;  %p3767_p1 = scmp.lt.u32.totalorder %s4455_s23, %s5096_s3 }
  0xc4   : > { %p3762_p5 = scmp.ne.s32.totalorder %s4455_s23, %s3761_s7  ;;  %p3768_p3 = scmp.lt.u32.totalorder %s3766_s27, %s3761_s7 }
  0xc5   : > { %p3770_p7 = scmp.lt.u32.totalorder %s3761_s7, %s4455_s23 }
  0xc6   : > { %p3764_p4 = pnand %p3762_p5, %p4220_p8  ;;  %p3769_p13 = por %p3768_p3, %p3767_p1 }
  0xc8   : > { %p3765_p9 = pneg %p3764_p4  ;;  %p3771_p12 = por %p3770_p7, %p3769_p13 }
  0xca   : > { %p3772_p6 = pnand %p3771_p12, %p3765_p9 }
  0xcc   : > { %3775 = shalt.err (!%p3772_p6)
}
  0xcd   : > { %s3776_s4 = scalar_lea.vmem %s4457_s0, 3072  ;;  %s4031_s18 = smov [#allocation8]  }
  0xce   : > { %p3777_p11 = scmp.ne.s32.totalorder %s4457_s0, %s3776_s4  ;;  %s3781_s13 = sshll.u32 %s4031_s18, 4  ;;  %s3782_s13 = int_to_ptr.vmem [resolvable:$false] %s3781_s13 }
  0xcf   : > { %s3783_s6 = scalar_lea.vmem %s3782_s13, 6144  ;;  %p3784_p0 = scmp.lt.s32.totalorder %s4457_s0, %s3782_s13 }
  0xd0   : > { %p3779_p2 = pnand %p3777_p11, %p4220_p8  ;;  %p3785_p5 = scmp.lt.s32.totalorder %s3783_s6, %s3776_s4 }
  0xd2   : > { %p3780_p10 = pneg %p3779_p2  ;;  %p3786_p4 = por %p3785_p5, %p3784_p0 }
  0xd4   : > { %p3787_p1 = pnand %p3786_p4, %p3780_p10 }
  0xd6   : > { %3790 = shalt.err (!%p3787_p1)
}
  0xd7   : > { %s4032_s7 = smov 192   ;;  %s5097_s24 = sld [smem:[#allocation33_spill]] }
  0xd8   : > { %s4033_s9 = smov 12   ;;  %p5098_p9 = scmp.ne.s32.totalorder %s5071_s10, 0 }
  0xd9   : > { %s5099_s17 = scalar_lea.sflag [#allocation7], %s4191_s30  ;;  %s5100_s29 = sld [smem:[#allocation48_spill]] }
  0xda   : > { %3273 = dma.hbm_to_vmem [thread:$0]  (!%p5098_p9), %s4455_s23, 3072, %s4457_s0, %s5099_s17, %s4032_s7, %s4032_s7, %s4033_s9  }
  0xdb   : > { %s593_s4 = scalar_lea.vmem [#allocation11], %s4194_s16 }
  0xdc   : > { %s600_s18 = sshll.u32 %s593_s4, 4  ;;  %s601_s18 = int_to_ptr.vmem [resolvable:$true] %s600_s18 }
  0xdf   : > { %s4486_s20 = scalar_lea.hbm %s5100_s29, %s5097_s24  ;;  %s3796_s0 = scalar_lea.hbm %s5100_s29, 32 }
  0xe0   : > { %s3791_s13 = scalar_lea.hbm %s4486_s20, 16  ;;  %p3797_p12 = scmp.lt.u32.totalorder %s4486_s20, %s5100_s29 }
  0xe1   : > { %p3792_p3 = scmp.ne.s32.totalorder %s4486_s20, %s3791_s13  ;;  %p3798_p6 = scmp.lt.u32.totalorder %s3796_s0, %s3791_s13 }
  0xe2   : > { %p3800_p2 = scmp.lt.u32.totalorder %s3791_s13, %s4486_s20 }
  0xe3   : > { %p3794_p13 = pnand %p3792_p3, %p4220_p8  ;;  %p3799_p11 = por %p3798_p6, %p3797_p12 }
  0xe5   : > { %p3795_p7 = pneg %p3794_p13  ;;  %p3801_p10 = por %p3800_p2, %p3799_p11 }
  0xe7   : > { %p3802_p0 = pnand %p3801_p10, %p3795_p7 }
  0xe9   : > { %3805 = shalt.err (!%p3802_p0)
}
  0xea   : > { %s3806_s9 = scalar_lea.vmem %s601_s18, 16  ;;  %s4034_s17 = smov [#allocation11]  }
  0xeb   : > { %p3807_p5 = scmp.ne.s32.totalorder %s601_s18, %s3806_s9  ;;  %s3811_s1 = sshll.u32 %s4034_s17, 4  ;;  %s3812_s1 = int_to_ptr.vmem [resolvable:$false] %s3811_s1 }
  0xec   : > { %s3813_s3 = scalar_lea.vmem %s3812_s1, 32  ;;  %p3814_p3 = scmp.lt.s32.totalorder %s601_s18, %s3812_s1 }
  0xed   : > { %p3809_p4 = pnand %p3807_p5, %p4220_p8  ;;  %p3815_p13 = scmp.lt.s32.totalorder %s3813_s3, %s3806_s9 }
  0xef   : > { %p3810_p1 = pneg %p3809_p4  ;;  %p3816_p9 = por %p3815_p13, %p3814_p3 }
  0xf1   : > { %p3817_p6 = pnand %p3816_p9, %p3810_p1 }
  0xf3   : > { %3820 = shalt.err (!%p3817_p6)
}
  0xf4   : > { %p5101_p12 = scmp.ne.s32.totalorder %s5071_s10, 0  ;;  %s5102_s27 = scalar_lea.sflag [#allocation10], %s4191_s30 }
  0xf5   : > { %s3821_s4 = scalar_lea.hbm %s4330_s12, 4096  ;;  %s3826_s0 = scalar_lea.hbm %s5079_s11, 8192 }
  0xf6   : > { %3279 = dma.hbm_to_vmem [thread:$0]  (!%p5101_p12), %s4486_s20, 16, %s601_s18, %s5102_s27  }
  0xf7   : > { %p3822_p7 = scmp.ne.s32.totalorder %s4330_s12, %s3821_s4  ;;  %p3827_p9 = scmp.lt.u32.totalorder %s4330_s12, %s5079_s11 }
  0xf8   : > { %p3828_p10 = scmp.lt.u32.totalorder %s3826_s0, %s3821_s4  ;;  %p3830_p5 = scmp.lt.u32.totalorder %s3821_s4, %s4330_s12 }
  0xf9   : > { %p3824_p11 = pnand %p3822_p7, %p4220_p8 }
  0xfa   : > { %p3829_p0 = por %p3828_p10, %p3827_p9 }
  0xfb   : > { %p3825_p2 = pneg %p3824_p11 }
  0xfc   : > { %p3831_p4 = por %p3830_p5, %p3829_p0 }
  0xfe   : > { %p3832_p1 = pnand %p3831_p4, %p3825_p2 }
 0x100   : > { %3835 = shalt.err (!%p3832_p1)
}
 0x101   : > { %s3836_s20 = scalar_lea.vmem %s4334_s14, 4096  ;;  %s4035_s18 = smov [#allocation14]  }
 0x102   : > { %p3837_p3 = scmp.ne.s32.totalorder %s4334_s14, %s3836_s20  ;;  %s3841_s9 = sshll.u32 %s4035_s18, 4  ;;  %s3842_s9 = int_to_ptr.vmem [resolvable:$false] %s3841_s9 }
 0x103   : > { %s3843_s17 = scalar_lea.vmem %s3842_s9, 8192  ;;  %p3844_p7 = scmp.lt.s32.totalorder %s4334_s14, %s3842_s9 }
 0x104   : > { %p3839_p13 = pnand %p3837_p3, %p4220_p8  ;;  %p3845_p11 = scmp.lt.s32.totalorder %s3843_s17, %s3836_s20 }
 0x106   : > { %p3840_p6 = pneg %p3839_p13  ;;  %p3846_p9 = por %p3845_p11, %p3844_p7 }
 0x108   : > { %p3847_p10 = pnand %p3846_p9, %p3840_p6 }
 0x10a   : > { %3850 = shalt.err (!%p3847_p10)
}
 0x10b   : > { %s5103_s1 = smov 4   ;;  %s5104_s3 = smov 64  }
 0x10c   : > { %s5105_s27 = scalar_lea.sflag [#allocation13], %s4191_s30  ;;  %s5106_s6 = sld [smem:[#allocation52_spill]] }
 0x10d   : > { %3285 = dma.hbm_to_vmem [thread:$0]  (!%p5101_p12), %s4330_s12, 4096, %s4334_s14, %s5105_s27, %s5104_s3, %s5104_s3, %s5103_s1  }
 0x10e   : > { %s659_s23 = scalar_lea.vmem [#allocation15], %s4194_s16  ;;  %s657_s30 = scalar_lea.sflag [#allocation16], %s4194_s16 }
 0x10f   : > { %s666_s7 = sshll.u32 %s659_s23, 4  ;;  %s667_s7 = int_to_ptr.vmem [resolvable:$true] %s666_s7 }
 0x112   : > { %s4538_s0 = scalar_lea.hbm %s5106_s6, %s5097_s24  ;;  %s3856_s14 = scalar_lea.hbm %s5106_s6, 32 }
 0x113   : > { %s3851_s20 = scalar_lea.hbm %s4538_s0, 16  ;;  %p3857_p4 = scmp.lt.u32.totalorder %s4538_s0, %s5106_s6 }
 0x114   : > { %p3852_p2 = scmp.ne.s32.totalorder %s4538_s0, %s3851_s20  ;;  %p3858_p1 = scmp.lt.u32.totalorder %s3856_s14, %s3851_s20 }
 0x115   : > { %p3860_p13 = scmp.lt.u32.totalorder %s3851_s20, %s4538_s0 }
 0x116   : > { %p3854_p0 = pnand %p3852_p2, %p4220_p8  ;;  %p3859_p3 = por %p3858_p1, %p3857_p4 }
 0x118   : > { %p3855_p5 = pneg %p3854_p0  ;;  %p3861_p6 = por %p3860_p13, %p3859_p3 }
 0x11a   : > { %p3862_p7 = pnand %p3861_p6, %p3855_p5 }
 0x11c   : > { %3865 = shalt.err (!%p3862_p7)
}
 0x11d   : > { %s3866_s16 = scalar_lea.vmem %s667_s7, 16  ;;  %s4036_s17 = smov [#allocation15]  }
 0x11e   : > { %p3867_p11 = scmp.ne.s32.totalorder %s667_s7, %s3866_s16  ;;  %s3871_s1 = sshll.u32 %s4036_s17, 4  ;;  %s3872_s1 = int_to_ptr.vmem [resolvable:$false] %s3871_s1 }
 0x11f   : > { %s3873_s3 = scalar_lea.vmem %s3872_s1, 32  ;;  %p3874_p2 = scmp.lt.s32.totalorder %s667_s7, %s3872_s1 }
 0x120   : > { %p3869_p9 = pnand %p3867_p11, %p4220_p8  ;;  %p3875_p0 = scmp.lt.s32.totalorder %s3873_s3, %s3866_s16 }
 0x122   : > { %p3870_p10 = pneg %p3869_p9  ;;  %p3876_p12 = por %p3875_p0, %p3874_p2 }
 0x124   : > { %p3877_p1 = pnand %p3876_p12, %p3870_p10 }
 0x126   : > { %3880 = shalt.err (!%p3877_p1)
}
 0x127   : > { %p5107_p4 = scmp.ne.s32.totalorder %s5071_s10, 0  ;;  %s5108_s27 = sld [smem:[#allocation34_spill]] }
 0x129   : > { %3288 = dma.hbm_to_vmem [thread:$0]  (!%p5107_p4), %s4538_s0, 16, %s667_s7, %s657_s30  }
 0x12d   : > { %p5109_p5 = scmp.ne.s32.totalorder %s5108_s27, 0 }
 0x12e   : > { %s4562_s15 = sand.u32 (!%p5109_p5), 1, %s3995_s22   ;;  %p5110_p8 = scmp.ne.s32.totalorder (!%p5109_p5), %s5083_s2, 0 }
 0x12f   : > { %675 = sbr.rel (%p5109_p5) target bundleno = 3271 (0xcc7), region = 80  ;;  %s5037_s4 = sshll.u32 (!%p5109_p5), %s4562_s15, 4 }
 0x130   : > { %s678_s13 = scalar_lea.sflag (!%p5109_p5), [#allocation4], %s4562_s15  ;;  %s4568_s23 = scalar_lea.vmem (!%p5109_p5), [#allocation3], %s5037_s4 }
 0x136   : > { %3954 = dma.done.wait (%p5110_p8), %s678_s13, 256  }
 0x137   : > { %3956 = vsyncadd (%p5110_p8), %s678_s13, 4294967040  ;;  %s686_s10 = sand.u32 1, %s4337_s25   ;;  %s4576_s0 = sand.u32 1, %s3983_s19  }
 0x138   : > { %s687_s7 = scalar_lea.sflag [#allocation7], %s686_s10  ;;  %p5111_p12 = scmp.ne.s32.totalorder %s5088_s8, 0 }
 0x13a   : > { %3958 = dma.done.wait (%p5111_p12), %s687_s7, 3088  }
 0x13b   : > { %3960 = vsyncadd (%p5111_p12), %s687_s7, 4294964208  ;;  %s3244_s20 = smul.u32 192, %s4576_s0  ;;  %s2947_s2 = sshll.u32 %s4576_s0, 6 }
 0x13c   : > { %s704_s12 = scalar_lea.sflag [#allocation10], %s686_s10  ;;  %s4587_s14 = scalar_lea.vmem [#allocation9], %s2947_s2 }
 0x13d   : > { %s4585_s18 = scalar_lea.vmem [#allocation8], %s3244_s20 }
 0x13e   : > { %3962 = dma.done.wait (%p5111_p12), %s704_s12, 1040  }
 0x13f   : > { %3964 = vsyncadd (%p5111_p12), %s704_s12, 4294966256  ;;  %s2948_s25 = sshll.u32 %s4576_s0, 8  ;;  %s721_s24 = scalar_lea.sflag [#allocation13], %s686_s10 }
 0x140   : > { %s4595_s16 = scalar_lea.vmem [#allocation12], %s2948_s25 }
 0x141   : > { %3966 = dma.done.wait (%p5111_p12), %s721_s24, 8192  }
 0x142   : > { %3968 = vsyncadd (%p5111_p12), %s721_s24, 4294959104  ;;  %s4601_s17 = scalar_lea.vmem [#allocation14], %s2948_s25  ;;  %s739_s1 = scalar_lea.sflag [#allocation16], %s4576_s0 }
 0x143   : > { %3970 = dma.done.wait (%p5111_p12), %s739_s1, 16  }
 0x144   : > { %3972 = vsyncadd (%p5111_p12), %s739_s1, 4294967280  ;;  %s5112_s27 = sld [smem:[#allocation29_spill]]  ;;  %s5114_s8 = sld [smem:[#allocation46_spill]] }
 0x145   : > { %s5115_s30 = sld [smem:[#allocation47_spill]]  ;;  %s5116_s29 = sld [smem:[#allocation44_spill]] }
 0x146   : > { %s5117_s19 = sld [smem:[#allocation50_spill]]  ;;  %s5118_s20 = sshll.u32 %s4562_s15, 4 }
 0x147   : > { %s4639_s2 = scalar_lea.vmem [#allocation17], %s5118_s20 }
 0x14a   : > { %p837_p3 = scmp.lt.s32.totalorder %s5112_s27, 1  ;;  %p2952_p13 = scmp.ne.s32.totalorder %s5112_s27, 0 }
 0x14b   : > { %v859_v0 = vld [vmem:[%s4568_s23] sm:$0xff] (!%p2952_p13)  ;;  %v860_v1 = vld [vmem:[%s4568_s23 + $0x8] sm:$0xff] (!%p2952_p13) }
 0x14c   : > { %s4611_s13 = scalar_select %p837_p3, %s5112_s27, 1 }
 0x14d   : > { %858 = sbr.rel (%p2952_p13) target bundleno = 340 (0x154), region = 116  ;;  %861 = vst [vmem:[#allocation2] sm:$0xff] (!%p2952_p13), %v859_v0  ;;  %862 = vst [vmem:[#allocation2 + $0x8] sm:$0xff] (!%p2952_p13), %v860_v1 }
 0x14e   : > { %s3245_s12 = smul.u32 3, %s4611_s13  ;;  %s846_s1 = scalar_lea.vmem %s5114_s8, %s4611_s13 }
 0x14f   : > { %s849_s4 = scalar_lea.vmem %s5115_s30, %s4611_s13  ;;  %s2951_s10 = sshll.u32 %s4611_s13, 2 }
 0x150   : > { %s4629_s26 = scalar_lea.vmem %s5116_s29, %s3245_s12  ;;  %s4635_s21 = scalar_lea.vmem %s5117_s19, %s2951_s10 }
 0x154 PF: > { %v863_v2 = vld [vmem:[#allocation2] sm:$0xff]  ;;  %v864_v3 = vld [vmem:[#allocation2 + $0x8] sm:$0xff]  ;;  %v4037_v6 = vmov 0.0   ;;  %v4038_v32 = vmov 0   ;;  %vm4039_vm0 = vmmov 0   ;;  %s5119_s22 = sld [smem:[#allocation41_spill]]  ;;  %v941_v55 = vlaneseq }
 0x155   : > { %867 = vadd.xlane.f32.xlu0 %v863_v2  ;;  %v3459_v4 = vld [vmem:[%s4585_s18 + $0x4] ss:$12 sps:$4 sm:$0xff]   ;;  %v3461_v5 = vld [vmem:[%s4585_s18] ss:$12 sps:$4 sm:$0xff]   ;;  %3154 = vmatprep.subr.bf16.mxu1 %v4037_v6  ;;  %v3462_v7 = vld [vmem:[%s4585_s18 + $0x8] ss:$12 sps:$4 sm:$0xff]  }
 0x156   : > { %v3463_v8 = vld [vmem:[%s4585_s18 + $0x1c] ss:$12 sps:$4 sm:$0xff]   ;;  %1084 = vmatprep.subr.bf16.mxu0 %v3459_v4  ;;  %3155 = vmatpush3.bf16.msra.mxu1 %v3462_v7  ;;  %v3465_v17 = vld [vmem:[%s4585_s18 + $0x18] ss:$12 sps:$4 sm:$0xff]   ;;  %v3466_v18 = vld [vmem:[%s4585_s18 + $0x20] ss:$12 sps:$4 sm:$0xff]  }
 0x157   : > { %1085 = vmatpush1.bf16.msra.mxu0 %v3461_v5  ;;  %3156 = vmatprep.subr.bf16.mxu1 %v4037_v6  ;;  %v3467_v19 = vld [vmem:[%s4585_s18 + $0x34] ss:$12 sps:$4 sm:$0xff]   ;;  %v3469_v20 = vld [vmem:[%s4585_s18 + $0x30] ss:$12 sps:$4 sm:$0xff]   ;;  %v3470_v21 = vld [vmem:[%s4585_s18 + $0x38] ss:$12 sps:$4 sm:$0xff]  }
 0x158   : > { %1086 = vmatprep.subr.bf16.mxu0 %v3463_v8  ;;  %v3471_v22 = vld [vmem:[%s4585_s18 + $0x4c] ss:$12 sps:$4 sm:$0xff]   ;;  %v3473_v23 = vld [vmem:[%s4585_s18 + $0x48] ss:$12 sps:$4 sm:$0xff]   ;;  %v3474_v24 = vld [vmem:[%s4585_s18 + $0x50] ss:$12 sps:$4 sm:$0xff]   ;;  %1116 = vmatprep.mubr.bf16.mxu0 %v4038_v32 }
 0x159   : > { %869 = vadd.xlane.f32.xlu0 %v864_v3  ;;  %v3475_v25 = vld [vmem:[%s4585_s18 + $0x64] ss:$12 sps:$4 sm:$0xff]   ;;  %v3477_v26 = vld [vmem:[%s4585_s18 + $0x60] ss:$12 sps:$4 sm:$0xff]   ;;  %v3478_v27 = vld [vmem:[%s4585_s18 + $0x68] ss:$12 sps:$4 sm:$0xff]   ;;  %3170 = vmatprep.mubr.msk.bf16.mxu1 %vm4039_vm0, %v4037_v6 }
 0x15a   : > { %3157 = vmatpush3.bf16.msra.mxu1 %v3466_v18  ;;  %v3479_v28 = vld [vmem:[%s4585_s18 + $0x7c] ss:$12 sps:$4 sm:$0xff]   ;;  %v3481_v29 = vld [vmem:[%s4585_s18 + $0x78] ss:$12 sps:$4 sm:$0xff]   ;;  %v3482_v30 = vld [vmem:[%s4585_s18 + $0x80] ss:$12 sps:$4 sm:$0xff]   ;;  %s5120_s29 = scalar_lea.vmem %s5119_s22, %s4611_s13 }
 0x15b   : > { %1087 = vmatpush1.bf16.msra.mxu0 %v3465_v17  ;;  %3158 = vmatprep.subr.bf16.mxu1 %v4037_v6  ;;  %v3483_v31 = vld [vmem:[%s4585_s18 + $0x94] ss:$12 sps:$4 sm:$0xff]   ;;  %v3485_v33 = vld [vmem:[%s4585_s18 + $0x90] ss:$12 sps:$4 sm:$0xff]   ;;  %v3486_v34 = vld [vmem:[%s4585_s18 + $0x98] ss:$12 sps:$4 sm:$0xff]  }
 0x15c   : > { %1088 = vmatprep.subr.bf16.mxu0 %v3467_v19  ;;  %v3487_v35 = vld [vmem:[%s4585_s18 + $0xac] ss:$12 sps:$4 sm:$0xff]   ;;  %v3489_v36 = vld [vmem:[%s4585_s18 + $0xa8] ss:$12 sps:$4 sm:$0xff]   ;;  %v3490_v37 = vld [vmem:[%s4585_s18 + $0xb0] ss:$12 sps:$4 sm:$0xff]  }
 0x15d   : > { %v2953_v46 = vld [vmem:[%s5120_s29] ss:$0 sm:$0xff]  ;;  %s5121_s6 = scalar_lea.vmem [#allocation6], %s4576_s0  ;;  %v4702_v56 = vshrl.u32 %v941_v55, 7  ;;  %vm1240_vm1 = vcmask 261120   ;;  %s4041_s23 = smov 64  }
 0x15e   : > { %3159 = vmatpush3.bf16.msra.mxu1 %v3470_v21  ;;  %v2954_v50 = vld [vmem:[%s5121_s6] ss:$0 sm:$0xff]  ;;  %s4042_s30 = smov 32   ;;  %vm1437_vm2 = vcmask 130048   ;;  %vm1732_vm3 = vcmask 523264   ;;  %vm1735_vm4 = vcmask 785408  }
 0x15f   : > { %1089 = vmatpush1.bf16.msra.mxu0 %v3469_v20  ;;  %3160 = vmatprep.subr.bf16.mxu1 %v4037_v6  ;;  %v943_v57 = vsub.s32 0, %v4702_v56  ;;  %v951_v58 = vsub.s32 2, %v4702_v56  ;;  %v939_v59 = vld [vmem:[%s4629_s26] sm:$0x7]  ;;  %v947_v60 = vsub.s32 1, %v4702_v56  ;;  %s4040_s26 = smov 96  }
 0x160   : > { %1090 = vmatprep.subr.bf16.mxu0 %v3471_v22  ;;  %s5124_s12 = scalar_lea.vmem [#allocation11], %s4576_s0 }
 0x161   : > { %v944_v61 = vrot.slane %v939_v59, %v943_v57  ;;  %v952_v62 = vrot.slane %v939_v59, %v951_v58  ;;  %v948_v1 = vrot.slane %v939_v59, %v947_v60 }
 0x162   : > { %3161 = vmatpush3.bf16.msra.mxu1 %v3474_v24 }
 0x163   : > { %1091 = vmatpush1.bf16.msra.mxu0 %v3473_v23  ;;  %3162 = vmatprep.subr.bf16.mxu1 %v4037_v6 }
 0x164   : > { %1092 = vmatprep.subr.bf16.mxu0 %v3475_v25 }
 0x166   : > { %3163 = vmatpush3.bf16.msra.mxu1 %v3478_v27 }
 0x167   : > { %1093 = vmatpush1.bf16.msra.mxu0 %v3477_v26  ;;  %3164 = vmatprep.subr.bf16.mxu1 %v4037_v6 }
 0x168   : > { %1094 = vmatprep.subr.bf16.mxu0 %v3479_v28 }
 0x16a   : > { %3165 = vmatpush3.bf16.msra.mxu1 %v3482_v30 }
 0x16b   : > { %1095 = vmatpush1.bf16.msra.mxu0 %v3481_v29  ;;  %3166 = vmatprep.subr.bf16.mxu1 %v4037_v6 }
 0x16c   : > { %1096 = vmatprep.subr.bf16.mxu0 %v3483_v31 }
 0x16e   : > { %3167 = vmatpush3.bf16.msra.mxu1 %v3486_v34 }
 0x16f   : > { %1097 = vmatpush1.bf16.msra.mxu0 %v3485_v33  ;;  %3168 = vmatprep.subr.bf16.mxu1 %v4037_v6 }
 0x170   : > { %1098 = vmatprep.subr.bf16.mxu0 %v3487_v35 }
 0x172   : > { %3169 = vmatpush3.bf16.msra.mxu1 %v3490_v37 }
 0x173   : > { %1099 = vmatpush1.bf16.msra.mxu0 %v3489_v36  ;;  %3174 = vmatprep.subr.bf16.mxu1 %v4037_v6 }
 0x174   : > { %3198 = vmatprep.subr.bf16.mxu0 %v4037_v6 }
 0x1e2   : > { %v868_v9 = vpop.xlane.xlu0 %867 }
 0x1e3   : > { %v872_v10 = vmul.f32 0.0078125, %v868_v9 }
 0x1e5   : > { %v4650_v11 = vsub.f32 %v863_v2, %v872_v10 }
 0x1e6   : > { %v870_v12 = vpop.xlane.xlu0 %869 }
 0x1e7   : > { %v873_v13 = vmul.f32 0.0078125, %v870_v12  ;;  %v876_v14 = vmul.f32 %v4650_v11, %v4650_v11 }
 0x1e9   : > { %v4654_v15 = vsub.f32 %v864_v3, %v873_v13  ;;  %878 = vadd.xlane.f32.xlu1 %v876_v14 }
 0x1eb   : > { %v877_v16 = vmul.f32 %v4654_v15, %v4654_v15 }
 0x1ed   : > { %880 = vadd.xlane.f32.xlu1 %v877_v16 }
 0x276   : > { %v879_v38 = vpop.xlane.xlu1 %878 }
 0x277   : > { %v882_v39 = vmul.f32 0.0078125, %v879_v38 }
 0x279   : > { %v884_v40 = vadd.f32 1e-05, %v882_v39 }
 0x27a   : > { %v881_v41 = vpop.xlane.xlu1 %880 }
 0x27b   : > { %3579 = vrsqrt.f32 %v884_v40  ;;  %v883_v42 = vmul.f32 0.0078125, %v881_v41 }
 0x27d   : > { %v885_v43 = vadd.f32 1e-05, %v883_v42 }
 0x27f   : > { %3581 = vrsqrt.f32 %v885_v43 }
 0x285   : > { %v3580_v44 = vpop.eup %3579 }
 0x286   : > { %v888_v45 = vmul.f32 %v3580_v44, %v4650_v11 }
 0x288   : > { %v896_v49 = vmul.f32 %v2953_v46, %v888_v45 }
 0x289   : > { %v3582_v47 = vpop.eup %3581 }
 0x28a   : > { %v889_v48 = vmul.f32 %v3582_v47, %v4654_v15  ;;  %v904_v52 = vadd.f32 %v2954_v50, %v896_v49 }
 0x28c   : > { %v897_v51 = vmul.f32 %v2953_v46, %v889_v48 }
 0x28e   : > { %v905_v53 = vadd.f32 %v2954_v50, %v897_v51 }
 0x290   : > { %v906_v54 = vpack.c.bf16 %v905_v53, %v904_v52 }
 0x292   : > { %1117 = vmatmul.mubr.bf16.vlgmr.msra.gmra.mrb[0].mxu0 %v906_v54  ;;  %3171 = vmatmul.mubr.bf16.vlgmr.msra.gmra.mrb[0].mxu1 %v906_v54 }
 0x293   : > { %3176 = vmatprep.mubr.msk.bf16.mxu1 %vm4039_vm0, %v4037_v6  ;;  %3200 = vmatprep.mubr.msk.bf16.mxu0 %vm4039_vm0, %v4037_v6 }
 0x365   : > { %v1118_v63 = vpop.f32.mrb[0].mxu0  ;;  %v1161_v0 = vpop.f32.mrb[0].mxu1 }
 0x366   : > { %v1120_v2 = vpop.f32.mrb[1].mxu0  ;;  %v3172_v3 = vpop.f32.mrb[1].mxu1  ;;  %v1119_v7 = vadd.f32 %v1118_v63, %v944_v61  ;;  %v1162_v8 = vadd.f32 %v1161_v0, %v952_v62 }
 0x367   : > { %v1122_v4 = vpop.f32.mrb[2].mxu0  ;;  %v1164_v5 = vpop.f32.mrb[2].mxu1  ;;  %v1121_v13 = vadd.f32 %v1120_v2, %v948_v1 }
 0x368   : > { %v1123_v9 = vadd.f32 %v1122_v4, %v944_v61  ;;  %v1165_v10 = vadd.f32 %v1164_v5, %v952_v62  ;;  %v1124_v11 = vpop.f32.mrb[3].mxu0  ;;  %v3173_v12 = vpop.f32.mrb[3].mxu1 }
 0x369   : > { %v1125_v14 = vadd.f32 %v1124_v11, %v948_v1 }
 0x36a   : > { %v1188_v15 = vpack.c.bf16 %v1123_v9, %v1119_v7  ;;  %v1236_v16 = vpack.c.bf16 %v1165_v10, %v1162_v8  ;;  %v3404_v17 = vpack.i.bf16 %v1123_v9, %v1119_v7  ;;  %v4715_v20 = vpack.i.bf16 %v1165_v10, %v1162_v8 }
 0x36b   : > { %v3399_v18 = vpack.i.bf16 %v1125_v14, %v1121_v13  ;;  %v1212_v19 = vpack.c.bf16 %v1125_v14, %v1121_v13 }
 0x36c   : > { %3199 = vmatpush3.bf16.msra.mxu0 %v1236_v16  ;;  %3405 = vrot.lane.b32.xlu1 %v3404_v17, %s4040_s26 }
 0x36d   : > { %3400 = vrot.lane.b32.xlu0 %v3399_v18, %s4040_s26  ;;  %v1245_v21 = vsel %vm1240_vm1, %v1212_v19, 0  ;;  %3210 = vmatprep.subr.bf16.mxu0 %v4037_v6 }
 0x36e   : > { %3175 = vmatpush3.bf16.xpose.msra.mxu1 %v1245_v21 }
 0x36f   : > { %3180 = vmatprep.subr.bf16.mxu1 %v4037_v6 }
 0x370   : > { %3410 = vrot.lane.b32.xlu1 %v3399_v18, %s4041_s23 }
 0x371   : > { %3420 = vrot.lane.b32.xlu0 %v3399_v18, %s4042_s30 }
 0x374   : > { %3415 = vrot.lane.b32.xlu1 %v3404_v17, %s4041_s23 }
 0x375   : > { %3177 = vmatmul.mubr.msk.bf16.vlgmr.msra.gmra.mrb[4].mxu1 %vm1240_vm1, %v1188_v15 }
 0x376   : > { %3182 = vmatprep.mubr.msk.bf16.mxu1 %vm4039_vm0, %v4037_v6 }
 0x378   : > { %3425 = vrot.lane.b32.xlu1 %v3404_v17, %s4042_s30 }
 0x3de   : > { %v3406_v22 = vpop.permute.xlu1 %3405 }
 0x3df   : > { %v3401_v23 = vpop.permute.xlu0 %3400  ;;  %v3408_v31 = vunpack.i.h.bf16 %v3406_v22  ;;  %v3407_v33 = vunpack.i.l.bf16 %v3406_v22 }
 0x3e0   : > { %v3403_v24 = vunpack.i.h.bf16 %v3401_v23  ;;  %v3402_v25 = vunpack.i.l.bf16 %v3401_v23 }
 0x3e1   : > { %v1189_v36 = vpack.c.bf16 %v3408_v31, %v3407_v33 }
 0x3e2   : > { %v1213_v26 = vpack.c.bf16 %v3403_v24, %v3402_v25  ;;  %v3411_v27 = vpop.permute.xlu1 %3410 }
 0x3e3   : > { %v3413_v28 = vunpack.i.h.bf16 %v3411_v27  ;;  %v3412_v29 = vunpack.i.l.bf16 %v3411_v27  ;;  %v3421_v35 = vpop.permute.xlu0 %3420 }
 0x3e4   : > { %v1292_v30 = vsel %vm1240_vm1, %v1213_v26, 0  ;;  %v3423_v38 = vunpack.i.h.bf16 %v3421_v35  ;;  %v3422_v39 = vunpack.i.l.bf16 %v3421_v35 }
 0x3e5   : > { %3181 = vmatpush3.bf16.xpose.msra.mxu1 %v1292_v30  ;;  %v1214_v34 = vpack.c.bf16 %v3413_v28, %v3412_v29 }
 0x3e6   : > { %3186 = vmatprep.subr.bf16.mxu1 %v4037_v6  ;;  %v3416_v37 = vpop.permute.xlu1 %3415  ;;  %v1215_v43 = vpack.c.bf16 %v3423_v38, %v3422_v39 }
 0x3e7   : > { %v1339_v40 = vsel %vm1240_vm1, %v1214_v34, 0  ;;  %v3418_v41 = vunpack.i.h.bf16 %v3416_v37  ;;  %v3417_v42 = vunpack.i.l.bf16 %v3416_v37 }
 0x3e8   : > { %v1386_v46 = vsel %vm1240_vm1, %v1215_v43, 0 }
 0x3e9   : > { %v1190_v44 = vpack.c.bf16 %v3418_v41, %v3417_v42 }
 0x3ea   : > { %v3426_v45 = vpop.permute.xlu1 %3425 }
 0x3eb   : > { %v3428_v47 = vunpack.i.h.bf16 %v3426_v45  ;;  %v3427_v48 = vunpack.i.l.bf16 %v3426_v45 }
 0x3ec   : > { %3183 = vmatmul.mubr.msk.bf16.vlgmr.msra.gmra.mrb[8].mxu1 %vm1240_vm1, %v1189_v36 }
 0x3ed   : > { %3187 = vmatpush3.bf16.xpose.msra.mxu1 %v1339_v40  ;;  %3188 = vmatprep.mubr.msk.bf16.mxu1 %vm4039_vm0, %v4037_v6  ;;  %v1191_v49 = vpack.c.bf16 %v3428_v47, %v3427_v48 }
 0x3ee   : > { %3192 = vmatprep.subr.bf16.mxu1 %v4037_v6 }
 0x3f4   : > { %3189 = vmatmul.mubr.msk.bf16.vlgmr.msra.gmra.mrb[12].mxu1 %vm1240_vm1, %v1190_v44 }
 0x3f5   : > { %3193 = vmatpush3.bf16.xpose.msra.mxu1 %v1386_v46  ;;  %3194 = vmatprep.mubr.msk.bf16.mxu1 %vm4039_vm0, %v4037_v6 }
 0x3f6   : > { %3204 = vmatprep.subr.bf16.mxu1 %v4037_v6 }
 0x3fc   : > { %3195 = vmatmul.mubr.msk.bf16.vlgmr.msra.gmra.mrb[16].mxu1 %vm1240_vm1, %v1191_v49 }
 0x3fd   : > { %3206 = vmatprep.mubr.msk.bf16.mxu1 %vm4039_vm0, %v4037_v6 }
 0x448   : > { %v1281_v50 = vpop.f32.mrb[4].mxu1 }
 0x449   : > { %v1429_v51 = vmul.f32 0.17677669, %v1281_v50  ;;  %v3178_v52 = vpop.f32.mrb[5].mxu1 }
 0x44a   : > { %v1284_v53 = vpop.f32.mrb[6].mxu1 }
 0x44b   : > { %v1430_v54 = vmul.f32 0.17677669, %v1284_v53  ;;  %v3179_v55 = vpop.f32.mrb[7].mxu1  ;;  %v1438_v59 = vsel %vm1437_vm2, %v1429_v51, -inf }
 0x44c   : > { %1439 = vmax.xlane.f32.xlu0 %v1438_v59 }
 0x44d   : > { %v1441_v61 = vsel %vm1437_vm2, %v1430_v54, -inf }
 0x44e   : > { %1442 = vmax.xlane.f32.xlu1 %v1441_v61 }
 0x4bf   : > { %v1328_v62 = vpop.f32.mrb[8].mxu1 }
 0x4c0   : > { %v1431_v63 = vmul.f32 0.17677669, %v1328_v62  ;;  %v3184_v0 = vpop.f32.mrb[9].mxu1 }
 0x4c1   : > { %v1331_v1 = vpop.f32.mrb[10].mxu1 }
 0x4c2   : > { %v1432_v2 = vmul.f32 0.17677669, %v1331_v1  ;;  %v3185_v3 = vpop.f32.mrb[11].mxu1  ;;  %v1444_v4 = vsel %vm1437_vm2, %v1431_v63, -inf }
 0x4c3   : > { %1445 = vmax.xlane.f32.xlu0 %v1444_v4 }
 0x4c4   : > { %v1447_v5 = vsel %vm1437_vm2, %v1432_v2, -inf }
 0x4c7   : > { %1448 = vmax.xlane.f32.xlu0 %v1447_v5  ;;  %v1375_v7 = vpop.f32.mrb[12].mxu1 }
 0x4c8   : > { %v1433_v8 = vmul.f32 0.17677669, %v1375_v7  ;;  %v3190_v9 = vpop.f32.mrb[13].mxu1 }
 0x4c9   : > { %v1378_v10 = vpop.f32.mrb[14].mxu1 }
 0x4ca   : > { %v1434_v11 = vmul.f32 0.17677669, %v1378_v10  ;;  %v3191_v12 = vpop.f32.mrb[15].mxu1  ;;  %v1450_v13 = vsel %vm1437_vm2, %v1433_v8, -inf }
 0x4cb   : > { %1451 = vmax.xlane.f32.xlu0 %v1450_v13 }
 0x4cc   : > { %v1453_v14 = vsel %vm1437_vm2, %v1434_v11, -inf }
 0x4cd   : > { %1454 = vmax.xlane.f32.xlu1 %v1453_v14 }
 0x4cf   : > { %v1422_v15 = vpop.f32.mrb[16].mxu1 }
 0x4d0   : > { %v1435_v16 = vmul.f32 0.17677669, %v1422_v15  ;;  %v3196_v17 = vpop.f32.mrb[17].mxu1 }
 0x4d1   : > { %v1425_v18 = vpop.f32.mrb[18].mxu1 }
 0x4d2   : > { %v4749_v19 = vmul.f32 0.17677669, %v1425_v18  ;;  %v3197_v21 = vpop.f32.mrb[19].mxu1  ;;  %v1456_v22 = vsel %vm1437_vm2, %v1435_v16, -inf }
 0x4d3   : > { %1457 = vmax.xlane.f32.xlu0 %v1456_v22 }
 0x4d4   : > { %v1459_v23 = vsel %vm1437_vm2, %v4749_v19, -inf }
 0x4d5   : > { %1460 = vmax.xlane.f32.xlu1 %v1459_v23 }
 0x4d9   : > { %v1440_v24 = vpop.xlane.xlu0 %1439 }
 0x4da   : > { %v1462_v25 = vsub.f32 %v1429_v51, %v1440_v24 }
 0x4db   : > { %v1443_v26 = vpop.xlane.xlu1 %1442 }
 0x4dc   : > { %v1470_v27 = vmul.f32 1.442695, %v1462_v25  ;;  %v1463_v28 = vsub.f32 %v1430_v54, %v1443_v26 }
 0x4de   : > { %3583 = vpow2.f32 %v1470_v27  ;;  %v1472_v29 = vmul.f32 1.442695, %v1463_v28 }
 0x4e0   : > { %3585 = vpow2.f32 %v1472_v29 }
 0x4e8   : > { %v3584_v30 = vpop.eup %3583 }
 0x4e9   : > { %v1486_v31 = vsel %vm1437_vm2, %v3584_v30, 0.0 }
 0x4ea   : > { %v3586_v33 = vpop.eup %3585  ;;  %1487 = vadd.xlane.f32.xlu0 %v1486_v31 }
 0x4eb   : > { %v1489_v34 = vsel %vm1437_vm2, %v3586_v33, 0.0 }
 0x4ec   : > { %1490 = vadd.xlane.f32.xlu1 %v1489_v34 }
 0x550   : > { %v1446_v35 = vpop.xlane.xlu0 %1445 }
 0x551   : > { %v1464_v36 = vsub.f32 %v1431_v63, %v1446_v35 }
 0x553   : > { %v1474_v37 = vmul.f32 1.442695, %v1464_v36 }
 0x554   : > { %v1449_v38 = vpop.xlane.xlu0 %1448 }
 0x555   : > { %3587 = vpow2.f32 %v1474_v37  ;;  %v1465_v39 = vsub.f32 %v1432_v2, %v1449_v38 }
 0x557   : > { %v1476_v40 = vmul.f32 1.442695, %v1465_v39 }
 0x558   : > { %v1452_v41 = vpop.xlane.xlu0 %1451 }
 0x559   : > { %3589 = vpow2.f32 %v1476_v40  ;;  %v1466_v42 = vsub.f32 %v1433_v8, %v1452_v41 }
 0x55a   : > { %v1455_v43 = vpop.xlane.xlu1 %1454 }
 0x55b   : > { %v1478_v44 = vmul.f32 1.442695, %v1466_v42  ;;  %v1467_v45 = vsub.f32 %v1434_v11, %v1455_v43 }
 0x55d   : > { %3591 = vpow2.f32 %v1478_v44  ;;  %v1480_v46 = vmul.f32 1.442695, %v1467_v45 }
 0x55f   : > { %v4756_v47 = vpop.eup %3587  ;;  %3593 = vpow2.f32 %v1480_v46 }
 0x560   : > { %v1458_v48 = vpop.xlane.xlu0 %1457  ;;  %v1492_v49 = vsel %vm1437_vm2, %v4756_v47, 0.0 }
 0x561   : > { %v1468_v50 = vsub.f32 %v1435_v16, %v1458_v48  ;;  %1493 = vadd.xlane.f32.xlu0 %v1492_v49 }
 0x562   : > { %v1461_v0 = vpop.xlane.xlu1 %1460 }
 0x563   : > { %v3590_v51 = vpop.eup %3589  ;;  %v1482_v52 = vmul.f32 1.442695, %v1468_v50  ;;  %v1469_v9 = vsub.f32 %v4749_v19, %v1461_v0 }
 0x564   : > { %v1495_v53 = vsel %vm1437_vm2, %v3590_v51, 0.0 }
 0x565   : > { %3595 = vpow2.f32 %v1482_v52  ;;  %1496 = vadd.xlane.f32.xlu1 %v1495_v53  ;;  %v1484_v10 = vmul.f32 1.442695, %v1469_v9  ;;  %v3492_v52 = vld [vmem:[%s4587_s14 + $0x8] sm:$0xff]   ;;  %v3498_v9 = vld [vmem:[%s4587_s14 + $0x38] sm:$0xff]  }
 0x567   : > { %v3592_v54 = vpop.eup %3591 }
 0x568   : > { %v1498_v55 = vsel %vm1437_vm2, %v3592_v54, 0.0 }
 0x569   : > { %v3594_v59 = vpop.eup %3593  ;;  %1499 = vadd.xlane.f32.xlu0 %v1498_v55 }
 0x56a   : > { %v1501_v61 = vsel %vm1437_vm2, %v3594_v59, 0.0 }
 0x56b   : > { %1502 = vadd.xlane.f32.xlu1 %v1501_v61  ;;  %v3493_v61 = vld [vmem:[%s4587_s14 + $0x10] sm:$0xff]  }
 0x56f   : > { %v4763_v62 = vpop.eup %3595 }
 0x570   : > { %v1504_v63 = vsel %vm1437_vm2, %v4763_v62, 0.0 }
 0x571   : > { %1505 = vadd.xlane.f32.xlu0 %v1504_v63 }
 0x577   : > { %v1488_v1 = vpop.xlane.xlu0 %1487 }
 0x578   : > { %3597 = vrcp.f32 %v1488_v1 }
 0x579   : > { %v1491_v2 = vpop.xlane.xlu1 %1490 }
 0x57a   : > { %3599 = vrcp.f32 %v1491_v2 }
 0x57b   : > { %3601 = vpow2.f32 %v1484_v10 }
 0x57c   : > { %3435 = vrot.lane.b32.xlu1 %v4715_v20, %s4041_s23 }
 0x582   : > { %v3598_v3 = vpop.eup %3597 }
 0x583   : > { %v1518_v5 = vmul.f32 %v3598_v3, %v3584_v30 }
 0x584   : > { %v3600_v4 = vpop.eup %3599 }
 0x585   : > { %v1519_v7 = vmul.f32 %v3600_v4, %v3586_v33  ;;  %v3602_v11 = vpop.eup %3601  ;;  %v3494_v4 = vld [vmem:[%s4587_s14 + $0x18] sm:$0xff]  }
 0x586   : > { %v1507_v12 = vsel %vm1437_vm2, %v3602_v11, 0.0 }
 0x587   : > { %3430 = vrot.lane.b32.xlu0 %v4715_v20, %s4040_s26  ;;  %v1526_v8 = vpack.c.bf16 %v1519_v7, %v1518_v5  ;;  %v3495_v5 = vld [vmem:[%s4587_s14 + $0x20] sm:$0xff]   ;;  %v3496_v7 = vld [vmem:[%s4587_s14 + $0x28] sm:$0xff]  }
 0x589   : > { %3201 = vmatmul.mubr.msk.bf16.vlgmr.msra.gmra.mrb[4].mxu0 %vm1437_vm2, %v1526_v8  ;;  %v3497_v8 = vld [vmem:[%s4587_s14 + $0x30] sm:$0xff]  }
 0x58a   : > { %3212 = vmatprep.mubr.msk.bf16.mxu0 %vm4039_vm0, %v4037_v6 }
 0x5a0   : > { %1508 = vadd.xlane.f32.xlu1 %v1507_v12 }
 0x5b1   : > { %3440 = vrot.lane.b32.xlu1 %v4715_v20, %s4042_s30 }
 0x5ee   : > { %v1494_v13 = vpop.xlane.xlu0 %1493 }
 0x5f2   : > { %v1497_v14 = vpop.xlane.xlu1 %1496 }
 0x5f3   : > { %3603 = vrcp.f32 %v1497_v14 }
 0x5f6   : > { %v1500_v15 = vpop.xlane.xlu0 %1499 }
 0x5f7   : > { %3605 = vrcp.f32 %v1500_v15 }
 0x5f8   : > { %3607 = vrcp.f32 %v1494_v13  ;;  %v1503_v16 = vpop.xlane.xlu1 %1502 }
 0x5f9   : > { %3609 = vrcp.f32 %v1503_v16 }
 0x5fc   : > { %v3436_v17 = vpop.permute.xlu1 %3435 }
 0x5fd   : > { %v3438_v18 = vunpack.i.h.bf16 %v3436_v17  ;;  %v3437_v19 = vunpack.i.l.bf16 %v3436_v17  ;;  %v3604_v23 = vpop.eup %3603 }
 0x5fe   : > { %v1506_v21 = vpop.xlane.xlu0 %1505  ;;  %v1521_v29 = vmul.f32 %v3604_v23, %v3590_v51  ;;  %v3491_v51 = vld [vmem:[%s4587_s14] sm:$0xff]  }
 0x5ff   : > { %v1238_v22 = vpack.c.bf16 %v3438_v18, %v3437_v19  ;;  %3611 = vrcp.f32 %v1506_v21 }
 0x601   : > { %v3606_v24 = vpop.eup %3605  ;;  %3211 = vmatpush3.bf16.msra.mxu0 %v1238_v22 }
 0x602   : > { %v3608_v25 = vpop.eup %3607  ;;  %v3431_v26 = vpop.permute.xlu0 %3430  ;;  %3222 = vmatprep.subr.bf16.mxu0 %v4037_v6  ;;  %v1522_v30 = vmul.f32 %v3606_v24, %v3592_v54 }
 0x603   : > { %v3610_v20 = vpop.eup %3609  ;;  %v3433_v27 = vunpack.i.h.bf16 %v3431_v26  ;;  %v3432_v28 = vunpack.i.l.bf16 %v3431_v26  ;;  %v1520_v34 = vmul.f32 %v3608_v25, %v4756_v47 }
 0x604   : > { %v1523_v31 = vmul.f32 %v3610_v20, %v3594_v59 }
 0x605   : > { %v1237_v33 = vpack.c.bf16 %v3433_v27, %v3432_v28  ;;  %v1527_v36 = vpack.c.bf16 %v1521_v29, %v1520_v34 }
 0x606   : > { %v1528_v35 = vpack.c.bf16 %v1523_v31, %v1522_v30  ;;  %v2987_v30 = vld [vmem:[%s846_s1] ss:$0 sm:$0xff] }
 0x607   : > { %3205 = vmatpush3.bf16.msra.mxu1 %v1237_v33 }
 0x608   : > { %3213 = vmatmul.mubr.msk.bf16.vlgmr.msra.gmra.mrb[8].mxu0 %vm1437_vm2, %v1528_v35  ;;  %3216 = vmatprep.subr.bf16.mxu1 %v4037_v6 }
 0x609   : > { %3238 = vmatprep.mubr.msk.bf16.mxu0 %vm4039_vm0, %v4037_v6  ;;  %v3612_v42 = vpop.eup %3611  ;;  %3223 = vmatpush3.bf16.msra.mxu0 %v3491_v51 }
 0x60a   : > { %3207 = vmatmul.mubr.msk.bf16.vlgmr.msra.gmra.mrb[20].mxu1 %vm1437_vm2, %v1527_v36  ;;  %v1524_v44 = vmul.f32 %v3612_v42, %v4763_v62  ;;  %3224 = vmatprep.subr.bf16.mxu0 %v4037_v6  ;;  %v3635_v36 = vld [vmem:[#allocation2] sm:$0xff]  ;;  %v3501_v42 = vld [vmem:[%s4595_s16 + $0x4] ss:$16 sps:$4 sm:$0xff]  }
 0x60b   : > { %3218 = vmatprep.mubr.msk.bf16.mxu1 %vm4039_vm0, %v4037_v6 }
 0x60d   : > { %3225 = vmatpush3.bf16.msra.mxu0 %v3492_v52 }
 0x60e   : > { %3226 = vmatprep.subr.bf16.mxu0 %v4037_v6 }
 0x611   : > { %3227 = vmatpush3.bf16.msra.mxu0 %v3493_v61  ;;  %v3513_v61 = vld [vmem:[%s4595_s16 + $0x44] ss:$16 sps:$4 sm:$0xff]  }
 0x612   : > { %3228 = vmatprep.subr.bf16.mxu0 %v4037_v6 }
 0x615   : > { %3229 = vmatpush3.bf16.msra.mxu0 %v3494_v4  ;;  %v3520_v4 = vld [vmem:[%s4595_s16 + $0x68] ss:$16 sps:$4 sm:$0xff]  }
 0x616   : > { %3230 = vmatprep.subr.bf16.mxu0 %v4037_v6 }
 0x619   : > { %3231 = vmatpush3.bf16.msra.mxu0 %v3495_v5  ;;  %v3525_v5 = vld [vmem:[%s4595_s16 + $0x84] ss:$16 sps:$4 sm:$0xff]  }
 0x61a   : > { %3232 = vmatprep.subr.bf16.mxu0 %v4037_v6 }
 0x61d   : > { %3233 = vmatpush3.bf16.msra.mxu0 %v3496_v7  ;;  %v3528_v7 = vld [vmem:[%s4595_s16 + $0x8c] ss:$16 sps:$4 sm:$0xff]  }
 0x61e   : > { %3234 = vmatprep.subr.bf16.mxu0 %v4037_v6 }
 0x621   : > { %3235 = vmatpush3.bf16.msra.mxu0 %v3497_v8  ;;  %v3523_v8 = vld [vmem:[%s4595_s16 + $0x80] ss:$16 sps:$4 sm:$0xff]  }
 0x622   : > { %3236 = vmatprep.subr.bf16.mxu0 %v4037_v6 }
 0x625   : > { %3237 = vmatpush3.bf16.msra.mxu0 %v3498_v9  ;;  %v3526_v9 = vld [vmem:[%s4595_s16 + $0x88] ss:$16 sps:$4 sm:$0xff]  }
 0x62d   : > { %v1509_v37 = vpop.xlane.xlu1 %1508 }
 0x62e   : > { %3613 = vrcp.f32 %v1509_v37 }
 0x631   : > { %v3441_v38 = vpop.permute.xlu1 %3440 }
 0x632   : > { %v3443_v39 = vunpack.i.h.bf16 %v3441_v38  ;;  %v3442_v40 = vunpack.i.l.bf16 %v3441_v38 }
 0x634   : > { %v1239_v41 = vpack.c.bf16 %v3443_v39, %v3442_v40 }
 0x636   : > { %3217 = vmatpush3.bf16.msra.mxu1 %v1239_v41  ;;  %v3499_v41 = vld [vmem:[%s4595_s16] ss:$16 sps:$4 sm:$0xff]  }
 0x637   : > { %2108 = vmatprep.subr.bf16.mxu1 %v3501_v42  ;;  %v3550_v42 = vld [vmem:[%s4601_s17 + $0x80] sm:$0xff]  }
 0x638   : > { %v3614_v43 = vpop.eup %3613 }
 0x639   : > { %v1525_v45 = vmul.f32 %v3614_v43, %v3602_v11  ;;  %v3502_v43 = vld [vmem:[%s4595_s16 + $0x8] ss:$16 sps:$4 sm:$0xff]  }
 0x63b   : > { %v1529_v46 = vpack.c.bf16 %v1525_v45, %v1524_v44  ;;  %v3504_v44 = vld [vmem:[%s4595_s16 + $0xc] ss:$16 sps:$4 sm:$0xff]   ;;  %v3507_v45 = vld [vmem:[%s4595_s16 + $0x24] ss:$16 sps:$4 sm:$0xff]  }
 0x63c   : > { %2151 = vmatprep.subr.bf16.mxu0 %v3504_v44  ;;  %v3551_v44 = vld [vmem:[%s4601_s17 + $0x48] sm:$0xff]  }
 0x63d   : > { %3219 = vmatmul.mubr.msk.bf16.vlgmr.msra.gmra.mrb[24].mxu1 %vm1437_vm2, %v1529_v46  ;;  %v3510_v46 = vld [vmem:[%s4595_s16 + $0x2c] ss:$16 sps:$4 sm:$0xff]  }
 0x63e   : > { %2140 = vmatprep.mubr.bf16.mxu1 %v4038_v32  ;;  %2109 = vmatpush1.bf16.msra.mxu1 %v3499_v41  ;;  %v3549_v41 = vld [vmem:[%s4601_s17] sm:$0xff]  }
 0x63f   : > { %2110 = vmatprep.subr.bf16.mxu1 %v3507_v45  ;;  %v3552_v45 = vld [vmem:[%s4601_s17 + $0xc8] sm:$0xff]  }
 0x65c   : > { %v1567_v47 = vpop.f32.mrb[4].mxu0 }
 0x65d   : > { %v3202_v48 = vpop.f32.mrb[5].mxu0 }
 0x65e   : > { %v1570_v49 = vpop.f32.mrb[6].mxu0  ;;  %v3508_v48 = vld [vmem:[%s4595_s16 + $0x28] ss:$16 sps:$4 sm:$0xff]  }
 0x65f   : > { %v3203_v50 = vpop.f32.mrb[7].mxu0 }
 0x6db   : > { %v1655_v53 = vpop.f32.mrb[8].mxu0 }
 0x6dc   : > { %v3214_v54 = vpop.f32.mrb[9].mxu0 }
 0x6dd   : > { %v1611_v55 = vpop.f32.mrb[20].mxu1  ;;  %v1658_v59 = vpop.f32.mrb[10].mxu0 }
 0x6de   : > { %v3449_v62 = vpack.i.bf16 %v1658_v59, %v1655_v53  ;;  %v3208_v63 = vpop.f32.mrb[21].mxu1  ;;  %v3215_v0 = vpop.f32.mrb[11].mxu0 }
 0x6df   : > { %v1614_v1 = vpop.f32.mrb[22].mxu1  ;;  %v3511_v63 = vld [vmem:[%s4595_s16 + $0x40] ss:$16 sps:$4 sm:$0xff]   ;;  %v3514_v0 = vld [vmem:[%s4595_s16 + $0x48] ss:$16 sps:$4 sm:$0xff]  }
 0x6e0   : > { %v3444_v2 = vpack.i.bf16 %v1614_v1, %v1611_v55  ;;  %3450 = vrot.lane.b32.xlu0 %v3449_v62, %s4041_s23  ;;  %v3209_v3 = vpop.f32.mrb[23].mxu1  ;;  %v3516_v62 = vld [vmem:[%s4595_s16 + $0x4c] ss:$16 sps:$4 sm:$0xff]   ;;  %v3519_v1 = vld [vmem:[%s4595_s16 + $0x64] ss:$16 sps:$4 sm:$0xff]  }
 0x6e1   : > { %v3517_v3 = vld [vmem:[%s4595_s16 + $0x60] ss:$16 sps:$4 sm:$0xff]  }
 0x6e2   : > { %3445 = vrot.lane.b32.xlu1 %v3444_v2, %s4042_s30  ;;  %v3522_v2 = vld [vmem:[%s4595_s16 + $0x6c] ss:$16 sps:$4 sm:$0xff]  }
 0x710   : > { %v1699_v10 = vpop.f32.mrb[24].mxu1 }
 0x711   : > { %v3220_v11 = vpop.f32.mrb[25].mxu1 }
 0x712   : > { %v1702_v12 = vpop.f32.mrb[26].mxu1  ;;  %v3534_v11 = vld [vmem:[%s4595_s16 + $0xac] ss:$16 sps:$4 sm:$0xff]  }
 0x713   : > { %v3454_v13 = vpack.i.bf16 %v1702_v12, %v1699_v10  ;;  %v3221_v14 = vpop.f32.mrb[27].mxu1  ;;  %v3531_v10 = vld [vmem:[%s4595_s16 + $0xa4] ss:$16 sps:$4 sm:$0xff]   ;;  %v3529_v12 = vld [vmem:[%s4595_s16 + $0xa0] ss:$16 sps:$4 sm:$0xff]  }
 0x714   : > { %v3535_v14 = vld [vmem:[%s4595_s16 + $0xc0] ss:$16 sps:$4 sm:$0xff]  }
 0x715   : > { %3455 = vrot.lane.b32.xlu1 %v3454_v13, %s4040_s26  ;;  %v3532_v13 = vld [vmem:[%s4595_s16 + $0xa8] ss:$16 sps:$4 sm:$0xff]  }
 0x752   : > { %v3451_v18 = vpop.permute.xlu0 %3450 }
 0x753   : > { %v3453_v6 = vunpack.i.h.bf16 %v3451_v18  ;;  %v3452_v22 = vunpack.i.l.bf16 %v3451_v18  ;;  %v3543_v18 = vld [vmem:[%s4595_s16 + $0xe4] ss:$16 sps:$4 sm:$0xff]  }
 0x754   : > { %v3446_v15 = vpop.permute.xlu1 %3445 }
 0x755   : > { %v3448_v16 = vunpack.i.h.bf16 %v3446_v15  ;;  %v3447_v17 = vunpack.i.l.bf16 %v3446_v15  ;;  %v3537_v15 = vld [vmem:[%s4595_s16 + $0xc4] ss:$16 sps:$4 sm:$0xff]  }
 0x757   : > { %v1731_v19 = vsel %vm1240_vm1, %v1570_v49, %v3448_v16  ;;  %v1730_v21 = vsel %vm1240_vm1, %v1567_v47, %v3447_v17  ;;  %v3505_v47 = vld [vmem:[%s4595_s16 + $0x20] ss:$16 sps:$4 sm:$0xff]   ;;  %v3538_v16 = vld [vmem:[%s4595_s16 + $0xc8] ss:$16 sps:$4 sm:$0xff]   ;;  %v3540_v17 = vld [vmem:[%s4595_s16 + $0xcc] ss:$16 sps:$4 sm:$0xff]  }
 0x758   : > { %v1733_v26 = vsel %vm1732_vm3, %v1730_v21, %v3452_v22  ;;  %v1734_v20 = vsel %vm1732_vm3, %v1731_v19, %v3453_v6  ;;  %2111 = vmatpush1.bf16.msra.mxu1 %v3505_v47  ;;  %v3546_v19 = vld [vmem:[%s4595_s16 + $0xec] ss:$16 sps:$4 sm:$0xff]   ;;  %v3541_v21 = vld [vmem:[%s4595_s16 + $0xe0] ss:$16 sps:$4 sm:$0xff]   ;;  %v3544_v6 = vld [vmem:[%s4595_s16 + $0xe8] ss:$16 sps:$4 sm:$0xff]  }
 0x759   : > { %2112 = vmatprep.subr.bf16.mxu1 %v3513_v61  ;;  %v3547_v22 = vld [vmem:[%s4601_s17 + $0x40] sm:$0xff]   ;;  %v3554_v47 = vld [vmem:[%s4601_s17 + $0x88] sm:$0xff]  }
 0x75a   : > { %v3564_v61 = vld [vmem:[%s4601_s17 + $0xe0] sm:$0xff]  }
 0x75c   : > { %2113 = vmatpush1.bf16.msra.mxu1 %v3511_v63  ;;  %v3566_v63 = vld [vmem:[%s4601_s17 + $0xa0] sm:$0xff]  }
 0x75d   : > { %2114 = vmatprep.subr.bf16.mxu1 %v3519_v1  ;;  %v3568_v1 = vld [vmem:[%s4601_s17 + $0xe8] sm:$0xff]  }
 0x760   : > { %2115 = vmatpush1.bf16.msra.mxu1 %v3517_v3  ;;  %v3570_v3 = vld [vmem:[%s4601_s17 + $0xa8] sm:$0xff]  }
 0x761   : > { %2116 = vmatprep.subr.bf16.mxu1 %v3525_v5  ;;  %v3572_v5 = vld [vmem:[%s4601_s17 + $0xf0] sm:$0xff]  }
 0x764   : > { %2117 = vmatpush1.bf16.msra.mxu1 %v3523_v8  ;;  %v3574_v8 = vld [vmem:[%s4601_s17 + $0xb0] sm:$0xff]  }
 0x765   : > { %2118 = vmatprep.subr.bf16.mxu1 %v3531_v10  ;;  %v3576_v10 = vld [vmem:[%s4601_s17 + $0xf8] sm:$0xff]  }
 0x768   : > { %2119 = vmatpush1.bf16.msra.mxu1 %v3529_v12  ;;  %v3578_v12 = vld [vmem:[%s4601_s17 + $0xb8] sm:$0xff]  }
 0x769   : > { %2120 = vmatprep.subr.bf16.mxu1 %v3537_v15 }
 0x76c   : > { %2121 = vmatpush1.bf16.msra.mxu1 %v3535_v14  ;;  %v1942_v14 = vsub.s32 3, %v4702_v56 }
 0x76d   : > { %2122 = vmatprep.subr.bf16.mxu1 %v3543_v18 }
 0x770   : > { %2123 = vmatpush1.bf16.msra.mxu1 %v3541_v21 }
 0x771   : > { %3110 = vmatprep.subr.bf16.mxu1 %v3547_v22 }
 0x787   : > { %v3456_v23 = vpop.permute.xlu1 %3455 }
 0x788   : > { %v3458_v24 = vunpack.i.h.bf16 %v3456_v23  ;;  %v3457_v25 = vunpack.i.l.bf16 %v3456_v23  ;;  %v3548_v23 = vld [vmem:[%s4601_s17 + $0xc0] sm:$0xff]  }
 0x78a   : > { %v1737_v27 = vsel %vm1735_vm4, %v1734_v20, %v3458_v24  ;;  %v1736_v28 = vsel %vm1735_vm4, %v1733_v26, %v3457_v25 }
 0x78b   : > { %v1738_v29 = vpack.c.bf16 %v1737_v27, %v1736_v28 }
 0x78d   : > { %3239 = vmatmul.mubr.bf16.vlgmr.msra.gmra.mrb[12].mxu0 %v1738_v29 }
 0x78e   : > { %2183 = vmatprep.mubr.bf16.mxu0 %v4038_v32  ;;  %v3636_v32 = vld [vmem:[#allocation2 + $0x8] sm:$0xff]  ;;  %2152 = vmatpush1.bf16.msra.mxu0 %v3502_v43 }
 0x78f   : > { %2153 = vmatprep.subr.bf16.mxu0 %v3510_v46  ;;  %v3553_v46 = vld [vmem:[%s4601_s17 + $0x8] sm:$0xff]  }
 0x792   : > { %2154 = vmatpush1.bf16.msra.mxu0 %v3508_v48  ;;  %v3555_v48 = vld [vmem:[%s4601_s17 + $0x50] sm:$0xff]  }
 0x793   : > { %2155 = vmatprep.subr.bf16.mxu0 %v3516_v62  ;;  %v3565_v62 = vld [vmem:[%s4601_s17 + $0x20] sm:$0xff]  }
 0x796   : > { %2156 = vmatpush1.bf16.msra.mxu0 %v3514_v0  ;;  %v3567_v0 = vld [vmem:[%s4601_s17 + $0x68] sm:$0xff]  }
 0x797   : > { %2157 = vmatprep.subr.bf16.mxu0 %v3522_v2  ;;  %v3569_v2 = vld [vmem:[%s4601_s17 + $0x28] sm:$0xff]  }
 0x79a   : > { %2158 = vmatpush1.bf16.msra.mxu0 %v3520_v4  ;;  %v3571_v4 = vld [vmem:[%s4601_s17 + $0x70] sm:$0xff]  }
 0x79b   : > { %2159 = vmatprep.subr.bf16.mxu0 %v3528_v7  ;;  %v3573_v7 = vld [vmem:[%s4601_s17 + $0x30] sm:$0xff]  }
 0x79e   : > { %2160 = vmatpush1.bf16.msra.mxu0 %v3526_v9  ;;  %v3575_v9 = vld [vmem:[%s4601_s17 + $0x78] sm:$0xff]  }
 0x79f   : > { %2161 = vmatprep.subr.bf16.mxu0 %v3534_v11  ;;  %v3577_v11 = vld [vmem:[%s4601_s17 + $0x38] sm:$0xff]  }
 0x7a2   : > { %2162 = vmatpush1.bf16.msra.mxu0 %v3532_v13  ;;  %v1926_v13 = vld [vmem:[%s4635_s21] sm:$0xf]  ;;  %s5125_s21 = scalar_lea.vmem [#allocation15], %s4576_s0 }
 0x7a3   : > { %2163 = vmatprep.subr.bf16.mxu0 %v3540_v17  ;;  %v1931_v15 = vrot.slane %v1926_v13, %v943_v57  ;;  %v1935_v17 = vrot.slane %v1926_v13, %v947_v60  ;;  %v1943_v18 = vrot.slane %v1926_v13, %v1942_v14 }
 0x7a6   : > { %2164 = vmatpush1.bf16.msra.mxu0 %v3538_v16  ;;  %v1939_v16 = vrot.slane %v1926_v13, %v951_v58 }
 0x7a7   : > { %2165 = vmatprep.subr.bf16.mxu0 %v3546_v19 }
 0x7aa   : > { %2166 = vmatpush1.bf16.msra.mxu0 %v3544_v6 }
 0x7ab   : > { %3132 = vmatprep.subr.bf16.mxu0 %v3548_v23 }
 0x860   : > { %v1844_v31 = vpop.f32.mrb[12].mxu0 }
 0x861   : > { %v1845_v33 = vadd.f32 %v2987_v30, %v1844_v31  ;;  %v3240_v34 = vpop.f32.mrb[13].mxu0  ;;  %v2996_v31 = vld [vmem:[%s849_s4] ss:$0 sm:$0xff]  ;;  %s5126_s4 = sld [smem:[#allocation29_spill]] }
 0x862   : > { %v1847_v35 = vpop.f32.mrb[14].mxu0 }
 0x863   : > { %v4816_v37 = vadd.f32 %v3635_v36, %v1845_v33  ;;  %v1848_v38 = vadd.f32 %v2987_v30, %v1847_v35  ;;  %v3241_v39 = vpop.f32.mrb[15].mxu0  ;;  %v2997_v36 = vld [vmem:[%s5124_s12] ss:$0 sm:$0xff] }
 0x865   : > { %v4818_v40 = vadd.f32 %v3636_v32, %v1848_v38  ;;  %1855 = vadd.xlane.f32.xlu0 %v4816_v37 }
 0x867   : > { %1857 = vadd.xlane.f32.xlu1 %v4818_v40  ;;  %p3063_p6 = scmp.ne.s32.totalorder %s5126_s4, 1 }
 0x868   : > { %s5127_s13 = sld [smem:[#allocation53_spill]] (!%p3063_p6)  ;;  %s5128_s8 = sld [smem:[#allocation54_spill]] (!%p3063_p6) }
 0x8f2   : > { %v1856_v49 = vpop.xlane.xlu0 %1855 }
 0x8f3   : > { %v1859_v50 = vmul.f32 0.0078125, %v1856_v49  ;;  %v3556_v49 = vld [vmem:[%s4601_s17 + $0xd0] sm:$0xff]  }
 0x8f4   : > { %v1858_v51 = vpop.xlane.xlu1 %1857 }
 0x8f5   : > { %v4831_v52 = vsub.f32 %v4816_v37, %v1859_v50  ;;  %v1860_v53 = vmul.f32 0.0078125, %v1858_v51  ;;  %v3557_v50 = vld [vmem:[%s4601_s17 + $0x10] sm:$0xff]  }
 0x8f6   : > { %v3558_v51 = vld [vmem:[%s4601_s17 + $0x90] sm:$0xff]  }
 0x8f7   : > { %v4834_v54 = vsub.f32 %v4818_v40, %v1860_v53  ;;  %v1863_v55 = vmul.f32 %v4831_v52, %v4831_v52  ;;  %v3560_v53 = vld [vmem:[%s4601_s17 + $0xd8] sm:$0xff]  }
 0x8f9   : > { %1865 = vadd.xlane.f32.xlu0 %v1863_v55  ;;  %v1864_v59 = vmul.f32 %v4834_v54, %v4834_v54  ;;  %v3562_v55 = vld [vmem:[%s4601_s17 + $0x98] sm:$0xff]  }
 0x8fd   : > { %1867 = vadd.xlane.f32.xlu0 %v1864_v59  ;;  %v3563_v59 = vld [vmem:[%s4601_s17 + $0x60] sm:$0xff]  }
 0x986   : > { %v1866_v24 = vpop.xlane.xlu0 %1865 }
 0x987   : > { %v1869_v25 = vmul.f32 0.0078125, %v1866_v24 }
 0x989   : > { %v1871_v26 = vadd.f32 1e-05, %v1869_v25 }
 0x98a   : > { %v1868_v20 = vpop.xlane.xlu0 %1867 }
 0x98b   : > { %3615 = vrsqrt.f32 %v1871_v26  ;;  %v1870_v27 = vmul.f32 0.0078125, %v1868_v20 }
 0x98d   : > { %v1872_v28 = vadd.f32 1e-05, %v1870_v27 }
 0x98f   : > { %3617 = vrsqrt.f32 %v1872_v28 }
 0x995   : > { %v3616_v29 = vpop.eup %3615 }
 0x996   : > { %v1875_v30 = vmul.f32 %v3616_v29, %v4831_v52  ;;  %v3559_v52 = vld [vmem:[%s4601_s17 + $0x58] sm:$0xff]  }
 0x998   : > { %v1883_v35 = vmul.f32 %v2996_v31, %v1875_v30 }
 0x999   : > { %v3618_v33 = vpop.eup %3617 }
 0x99a   : > { %v1876_v34 = vmul.f32 %v3618_v33, %v4834_v54  ;;  %v1891_v39 = vadd.f32 %v2997_v36, %v1883_v35  ;;  %v3561_v54 = vld [vmem:[%s4601_s17 + $0x18] sm:$0xff]  }
 0x99c   : > { %v1884_v38 = vmul.f32 %v2996_v31, %v1876_v34 }
 0x99e   : > { %v1892_v32 = vadd.f32 %v2997_v36, %v1884_v38 }
 0x9a0   : > { %v1893_v43 = vpack.c.bf16 %v1892_v32, %v1891_v39 }
 0x9a2   : > { %2141 = vmatmul.mubr.bf16.vlgmr.msra.gmra.mrb[28].mxu1 %v1893_v43  ;;  %2184 = vmatmul.mubr.bf16.vlgmr.msra.gmra.mrb[16].mxu0 %v1893_v43 }
 0x9a3   : > { %3111 = vmatpush3.bf16.msra.mxu1 %v3549_v41  ;;  %3133 = vmatpush3.bf16.msra.mxu0 %v3550_v42 }
 0x9a4   : > { %3112 = vmatprep.subr.bf16.mxu1 %v3551_v44  ;;  %3134 = vmatprep.subr.bf16.mxu0 %v3552_v45 }
 0x9a7   : > { %3113 = vmatpush3.bf16.msra.mxu1 %v3553_v46  ;;  %3135 = vmatpush3.bf16.msra.mxu0 %v3554_v47 }
 0x9a8   : > { %3114 = vmatprep.subr.bf16.mxu1 %v3555_v48  ;;  %3136 = vmatprep.subr.bf16.mxu0 %v3556_v49 }
 0x9ab   : > { %3115 = vmatpush3.bf16.msra.mxu1 %v3557_v50  ;;  %3137 = vmatpush3.bf16.msra.mxu0 %v3558_v51 }
 0x9ac   : > { %3116 = vmatprep.subr.bf16.mxu1 %v3559_v52  ;;  %3138 = vmatprep.subr.bf16.mxu0 %v3560_v53 }
 0x9af   : > { %3117 = vmatpush3.bf16.msra.mxu1 %v3561_v54  ;;  %3139 = vmatpush3.bf16.msra.mxu0 %v3562_v55 }
 0x9b0   : > { %3118 = vmatprep.subr.bf16.mxu1 %v3563_v59  ;;  %3140 = vmatprep.subr.bf16.mxu0 %v3564_v61 }
 0x9b3   : > { %3119 = vmatpush3.bf16.msra.mxu1 %v3565_v62  ;;  %3141 = vmatpush3.bf16.msra.mxu0 %v3566_v63 }
 0x9b4   : > { %3120 = vmatprep.subr.bf16.mxu1 %v3567_v0  ;;  %3142 = vmatprep.subr.bf16.mxu0 %v3568_v1 }
 0x9b7   : > { %3121 = vmatpush3.bf16.msra.mxu1 %v3569_v2  ;;  %3143 = vmatpush3.bf16.msra.mxu0 %v3570_v3 }
 0x9b8   : > { %3122 = vmatprep.subr.bf16.mxu1 %v3571_v4  ;;  %3144 = vmatprep.subr.bf16.mxu0 %v3572_v5 }
 0x9bb   : > { %3123 = vmatpush3.bf16.msra.mxu1 %v3573_v7  ;;  %3145 = vmatpush3.bf16.msra.mxu0 %v3574_v8 }
 0x9bc   : > { %3124 = vmatprep.subr.bf16.mxu1 %v3575_v9  ;;  %3146 = vmatprep.subr.bf16.mxu0 %v3576_v10 }
 0x9bf   : > { %3125 = vmatpush3.bf16.msra.mxu1 %v3577_v11  ;;  %3147 = vmatpush3.bf16.msra.mxu0 %v3578_v12 }
 0xa75   : > { %v2142_v19 = vpop.f32.mrb[28].mxu1  ;;  %v2185_v21 = vpop.f32.mrb[16].mxu0 }
 0xa76   : > { %v2143_v6 = vadd.f32 %v2142_v19, %v1931_v15  ;;  %v2186_v22 = vadd.f32 %v2185_v21, %v1939_v16  ;;  %v2144_v23 = vpop.f32.mrb[29].mxu1  ;;  %v2187_v24 = vpop.f32.mrb[17].mxu0  ;;  %v3030_v19 = vld [vmem:[%s5125_s21] ss:$0 sm:$0xff] }
 0xa77   : > { %v2145_v25 = vadd.f32 %v2144_v23, %v1935_v17  ;;  %v2188_v26 = vadd.f32 %v2187_v24, %v1943_v18  ;;  %v2146_v20 = vpop.f32.mrb[30].mxu1  ;;  %v2189_v27 = vpop.f32.mrb[18].mxu0 }
 0xa78   : > { %v2202_v28 = vmul.f32 0.70710677, %v2143_v6  ;;  %v2204_v29 = vmul.f32 0.70710677, %v2186_v22  ;;  %v2147_v58 = vadd.f32 %v2146_v20, %v1931_v15  ;;  %v2190_v31 = vadd.f32 %v2189_v27, %v1939_v16  ;;  %v2148_v56 = vpop.f32.mrb[31].mxu1  ;;  %v2191_v60 = vpop.f32.mrb[19].mxu0 }
 0xa79   : > { %v2203_v57 = vmul.f32 0.70710677, %v2145_v25  ;;  %v2205_v30 = vmul.f32 0.70710677, %v2188_v26  ;;  %v2149_v33 = vadd.f32 %v2148_v56, %v1935_v17  ;;  %v2192_v34 = vadd.f32 %v2191_v60, %v1943_v18 }
 0xa7a   : > { %3619 = verf.f32 %v2202_v28  ;;  %v2206_v35 = vmul.f32 0.70710677, %v2147_v58  ;;  %v2208_v36 = vmul.f32 0.70710677, %v2190_v31  ;;  %v2194_v46 = vmul.f32 0.5, %v2143_v6 }
 0xa7b   : > { %3621 = verf.f32 %v2204_v29  ;;  %v2207_v38 = vmul.f32 0.70710677, %v2149_v33  ;;  %v2209_v39 = vmul.f32 0.70710677, %v2192_v34  ;;  %v2196_v47 = vmul.f32 0.5, %v2186_v22 }
 0xa7c   : > { %3623 = verf.f32 %v2203_v57  ;;  %v2195_v50 = vmul.f32 0.5, %v2145_v25  ;;  %v2198_v52 = vmul.f32 0.5, %v2147_v58  ;;  %v2197_v55 = vmul.f32 0.5, %v2188_v26 }
 0xa7d   : > { %3625 = verf.f32 %v2205_v30  ;;  %v2200_v61 = vmul.f32 0.5, %v2190_v31  ;;  %v2199_v2 = vmul.f32 0.5, %v2149_v33  ;;  %v2201_v7 = vmul.f32 0.5, %v2192_v34 }
 0xa7e   : > { %3627 = verf.f32 %v2206_v35 }
 0xa7f   : > { %3629 = verf.f32 %v2208_v36 }
 0xa80   : > { %3631 = verf.f32 %v2207_v38 }
 0xa81   : > { %3633 = verf.f32 %v2209_v39 }
 0xa84   : > { %v3620_v32 = vpop.eup %3619 }
 0xa85   : > { %v3622_v41 = vpop.eup %3621  ;;  %v2218_v44 = vadd.f32 1.0, %v3620_v32 }
 0xa86   : > { %v3624_v42 = vpop.eup %3623  ;;  %v2220_v48 = vadd.f32 1.0, %v3622_v41 }
 0xa87   : > { %v3626_v43 = vpop.eup %3625  ;;  %v2219_v51 = vadd.f32 1.0, %v3624_v42  ;;  %v2226_v0 = vmul.f32 %v2218_v44, %v2194_v46  ;;  %v3064_v46 = vld [vmem:[%s5127_s13] ss:$0 sm:$0xff] (!%p3063_p6) }
 0xa88   : > { %v3628_v45 = vpop.eup %3627  ;;  %v2221_v59 = vadd.f32 1.0, %v3626_v43  ;;  %v2228_v4 = vmul.f32 %v2220_v48, %v2196_v47  ;;  %v3065_v48 = vld [vmem:[%s5128_s8] ss:$0 sm:$0xff] (!%p3063_p6) }
 0xa89   : > { %v3630_v49 = vpop.eup %3629  ;;  %v2222_v53 = vadd.f32 1.0, %v3628_v45  ;;  %v2227_v9 = vmul.f32 %v2219_v51, %v2195_v50 }
 0xa8a   : > { %v3632_v54 = vpop.eup %3631  ;;  %v2224_v62 = vadd.f32 1.0, %v3630_v49  ;;  %v2229_v12 = vmul.f32 %v2221_v59, %v2197_v55 }
 0xa8b   : > { %v3634_v63 = vpop.eup %3633  ;;  %v2230_v1 = vmul.f32 %v2222_v53, %v2198_v52  ;;  %v2223_v3 = vadd.f32 1.0, %v3632_v54 }
 0xa8c   : > { %v2232_v5 = vmul.f32 %v2224_v62, %v2200_v61  ;;  %v2225_v8 = vadd.f32 1.0, %v3634_v63 }
 0xa8d   : > { %v2234_v10 = vpack.c.bf16 %v2230_v1, %v2226_v0  ;;  %v2231_v11 = vmul.f32 %v2223_v3, %v2199_v2 }
 0xa8e   : > { %v2236_v13 = vpack.c.bf16 %v2232_v5, %v2228_v4  ;;  %v2233_v14 = vmul.f32 %v2225_v8, %v2201_v7 }
 0xa8f   : > { %v2235_v15 = vpack.c.bf16 %v2231_v11, %v2227_v9 }
 0xa90   : > { %v2237_v16 = vpack.c.bf16 %v2233_v14, %v2229_v12 }
 0xa91   : > { %2533 = vmatprep.mubr.bf16.mxu1 %v2235_v15 }
 0xa92   : > { %2574 = vmatprep.mubr.bf16.mxu0 %v2237_v16  ;;  %2534 = vmatmul.mubr.bf16.vlgmr.msra.gmra.mrb[32].mxu1 %v2234_v10 }
 0xa93   : > { %2575 = vmatmul.mubr.bf16.vlgmr.msra.gmra.mrb[20].mxu0 %v2236_v13 }
 0xb65   : > { %v3126_v17 = vpop.f32.mrb[32].mxu1 }
 0xb66   : > { %v3148_v18 = vpop.f32.mrb[20].mxu0  ;;  %v3127_v21 = vpop.f32.mrb[33].mxu1 }
 0xb67   : > { %v3128_v6 = vadd.f32 %v3127_v21, %v3126_v17  ;;  %v3149_v22 = vpop.f32.mrb[21].mxu0  ;;  %v3129_v23 = vpop.f32.mrb[34].mxu1 }
 0xb68   : > { %v3150_v24 = vadd.f32 %v3149_v22, %v3148_v18  ;;  %v3151_v25 = vpop.f32.mrb[22].mxu0  ;;  %v3130_v26 = vpop.f32.mrb[35].mxu1 }
 0xb69   : > { %v2536_v20 = vadd.f32 %v3128_v6, %v3030_v19  ;;  %v3131_v27 = vadd.f32 %v3130_v26, %v3129_v23  ;;  %v3152_v28 = vpop.f32.mrb[23].mxu0 }
 0xb6a   : > { %v3153_v29 = vadd.f32 %v3152_v28, %v3151_v25 }
 0xb6b   : > { %v2577_v57 = vadd.f32 %v3150_v24, %v2536_v20  ;;  %v2539_v30 = vadd.f32 %v3131_v27, %v3030_v19  ;;  %2590 = sbr.rel (%p3063_p6) target bundleno = 3243 (0xcab), region = 120 }
 0xb6d   : > { %v2583_v58 = vadd.f32 %v2577_v57, %v4816_v37  ;;  %v2580_v31 = vadd.f32 %v3153_v29, %v2539_v30 }
 0xb6f   : > { %2585 = vst [vmem:[#allocation2] sm:$0xff] %v2583_v58  ;;  %v2584_v56 = vadd.f32 %v2580_v31, %v4818_v40  ;;  %2593 = vadd.xlane.f32.xlu0 (!%p3063_p6), %v2583_v58 }
 0xb71   : > { %2586 = vst [vmem:[#allocation2 + $0x8] sm:$0xff] %v2584_v56 }
 0xb73   : > { %2595 = vadd.xlane.f32.xlu0 %v2584_v56 }
 0xbfc   : > { %v2594_v60 = vpop.xlane.xlu0 %2593 }
 0xbfd   : > { %v2597_v33 = vmul.f32 0.0078125, %v2594_v60 }
 0xbff   : > { %v2599_v34 = vsub.f32 %v2583_v58, %v2597_v33 }
 0xc00   : > { %v2596_v35 = vpop.xlane.xlu0 %2595 }
 0xc01   : > { %v2598_v36 = vmul.f32 0.0078125, %v2596_v35  ;;  %v2601_v38 = vmul.f32 %v2599_v34, %v2599_v34 }
 0xc03   : > { %v2600_v39 = vsub.f32 %v2584_v56, %v2598_v36  ;;  %2603 = vadd.xlane.f32.xlu1 %v2601_v38 }
 0xc05   : > { %v2602_v32 = vmul.f32 %v2600_v39, %v2600_v39 }
 0xc07   : > { %2605 = vadd.xlane.f32.xlu1 %v2602_v32 }
 0xc90   : > { %v2604_v37 = vpop.xlane.xlu1 %2603 }
 0xc91   : > { %v2607_v41 = vmul.f32 0.0078125, %v2604_v37 }
 0xc93   : > { %v2609_v40 = vadd.f32 1e-05, %v2607_v41 }
 0xc94   : > { %v2606_v42 = vpop.xlane.xlu1 %2605 }
 0xc95   : > { %3637 = vrsqrt.f32 %v2609_v40  ;;  %v2608_v43 = vmul.f32 0.0078125, %v2606_v42 }
 0xc97   : > { %v2610_v44 = vadd.f32 1e-05, %v2608_v43 }
 0xc99   : > { %3639 = vrsqrt.f32 %v2610_v44 }
 0xc9f   : > { %v3638_v45 = vpop.eup %3637 }
 0xca0   : > { %v2613_v47 = vmul.f32 %v3638_v45, %v2599_v34 }
 0xca2   : > { %v2621_v49 = vmul.f32 %v3064_v46, %v2613_v47 }
 0xca3   : > { %v3640_v50 = vpop.eup %3639 }
 0xca4   : > { %v2629_v51 = vadd.f32 %v3065_v48, %v2621_v49  ;;  %v2614_v52 = vmul.f32 %v3640_v50, %v2600_v39 }
 0xca6   : > { %2631 = vst [vmem:[%s4639_s2] sm:$0xff] %v2629_v51  ;;  %v2622_v53 = vmul.f32 %v3064_v46, %v2614_v52 }
 0xca8   : > { %v2630_v54 = vadd.f32 %v3065_v48, %v2622_v53 }
 0xcaa   : > { %2632 = vst [vmem:[%s4639_s2 + $0x8] sm:$0xff] %v2630_v54 }
 0xcab PF: > { %s5129_s1 = sld [smem:[#allocation30_spill]]  ;;  %s5130_s11 = sld [smem:[#allocation55_spill]] }
 0xcac   : > { %s2647_s22 = sshll.u32 %s4639_s2, 4  ;;  %s2634_s29 = scalar_lea.sflag [#allocation5], %s4562_s15  ;;  %s4933_s22 = int_to_ptr.vmem [resolvable:$true] %s2647_s22 }
 0xcad   : > { %s3881_s6 = scalar_lea.vmem %s4933_s22, 256  ;;  %p5131_p11 = scmp.ne.s32.totalorder %s5090_s5, 0 }
 0xcae   : > { %p3882_p7 = scmp.ne.s32.totalorder %s4933_s22, %s3881_s6  ;;  %s4043_s26 = smov [#allocation17]  }
 0xcaf   : > { %s3885_s23 = sshll.u32 %s4043_s26, 4  ;;  %s3886_s23 = int_to_ptr.vmem [resolvable:$false] %s3885_s23 }
 0xcb0   : > { %p3883_p9 = pnand %p3882_p7, %p5131_p11  ;;  %s3887_s30 = scalar_lea.vmem %s3886_s23, 512 }
 0xcb1   : > { %s3075_s10 = sshll.u32 %s5129_s1, 8  ;;  %p3888_p2 = scmp.lt.s32.totalorder %s4933_s22, %s3886_s23 }
 0xcb2   : > { %s4930_s19 = scalar_lea.hbm %s5130_s11, %s3075_s10  ;;  %p3884_p10 = pneg %p3883_p9 }
 0xcb3   : > { %p3889_p0 = scmp.lt.s32.totalorder %s3887_s30, %s3881_s6 }
 0xcb5   : > { %p3890_p1 = por %p3889_p0, %p3888_p2 }
 0xcb7   : > { %p3891_p4 = pnand %p3890_p1, %p3884_p10 }
 0xcb9   : > { %3894 = shalt.err (!%p3891_p4)
}
 0xcba   : > { %s3895_s2 = scalar_lea.hbm %s4930_s19, 256  ;;  %s3899_s9 = scalar_lea.hbm %s5130_s11, 512 }
 0xcbb   : > { %p3896_p5 = scmp.ne.s32.totalorder %s4930_s19, %s3895_s2  ;;  %p3900_p3 = scmp.lt.u32.totalorder %s4930_s19, %s5130_s11 }
 0xcbc   : > { %p3901_p13 = scmp.lt.u32.totalorder %s3899_s9, %s3895_s2  ;;  %p3903_p7 = scmp.lt.u32.totalorder %s3895_s2, %s4930_s19 }
 0xcbd   : > { %p3897_p8 = pnand %p3896_p5, %p5131_p11 }
 0xcbe   : > { %p3902_p6 = por %p3901_p13, %p3900_p3 }
 0xcbf   : > { %p3898_p12 = pneg %p3897_p8 }
 0xcc0   : > { %p3904_p9 = por %p3903_p7, %p3902_p6 }
 0xcc2   : > { %p3905_p10 = pnand %p3904_p9, %p3898_p12 }
 0xcc4   : > { %3908 = shalt.err (!%p3905_p10)
}
 0xcc5   : > { %s4044_s27 = smov 128   ;;  %s4045_s12 = smov 8  }
 0xcc6   : > { %3262 = dma.vmem_to_hbm [thread:$0]  (%p5131_p11), %s4933_s22, 256, %s4930_s19, %s2634_s29, %s4044_s27, %s4044_s27, %s4045_s12  }
 0xcc7 PF: > { %s5132_s21 = sld [smem:[#allocation26_spill]]  ;;  %s5133_s4 = sld [smem:[#allocation39_spill]] }
 0xcc8   : > { %p3294_p2 = scmp.ge.s32.totalorder %s4019_s28, 2 }
 0xccd   : > { %s2662_s0 = sand.u32 1, %s5132_s21   ;;  %p5134_p0 = scmp.ne.s32.totalorder %s5133_s4, 0 }
 0xcce   : > { %s2663_s17 = scalar_lea.sflag [#allocation5], %s2662_s0 }
 0xccf   : > { %p3290_p1 = pnand %p3294_p2, %p5134_p0 }
 0xcd1   : > { %3974 = dma.done.wait (!%p3290_p1), %s2663_s17, 256  }
 0xcd2   : > { %3976 = vsyncadd (!%p3290_p1), %s2663_s17, 4294967040  ;;  %s43_s28 = sadd.s32 1, %s4019_s28   ;;  %s5135_s18 = sld [smem:[#allocation24_spill]] }
 0xcd3   : > { %p40_p4 = scmp.ge.s32.totalorder %s43_s28, 6   ;;  %s5136_s19 = sld [smem:[#allocation25_spill]] }
 0xcd4   : > { %s5137_s20 = sld [smem:[#allocation37_spill]]  ;;  %s5138_s21 = sld [smem:[#allocation27_spill]] }
 0xcd5   : > { %s5139_s22 = sld [smem:[#allocation28_spill]]  ;;  %s5140_s23 = sld [smem:[#allocation38_spill]] }
 0xcd6   : > { %s5141_s24 = sld [smem:[#allocation31_spill]]  ;;  %s5142_s25 = sld [smem:[#allocation32_spill]] }
 0xcd7   : > { %s5143_s26 = sld [smem:[#allocation35_spill]]  ;;  %s5144_s27 = sld [smem:[#allocation36_spill]] }
 0xcd8   :  { %42 = sbr.rel (!%p40_p4) target bundleno = 34 (0x22), region = 233 }
 0xcdf   :  { %2668 = vsyncpa [#allocation4], 1 }
 0xce0   :  { %2670 = vsyncpa [#allocation4 + $0x1], 1 }
 0xce1   :  { %2671 = vsyncpa [#allocation7], 1 }
 0xce2   :  { %2673 = vsyncpa [#allocation7 + $0x1], 1 }
 0xce3   :  { %2674 = vsyncpa [#allocation10], 1 }
 0xce4   :  { %2676 = vsyncpa [#allocation10 + $0x1], 1 }
 0xce5   :  { %2677 = vsyncpa [#allocation13], 1 }
 0xce6   :  { %2679 = vsyncpa [#allocation13 + $0x1], 1 }
 0xce7   :  { %2680 = vsyncpa [#allocation16], 1 }
 0xce8   :  { %2682 = vsyncpa [#allocation16 + $0x1], 1 }
 0xce9   :  { %2683 = vsyncpa [#allocation5], 1 }
 0xcea   :  { %2685 = vsyncpa [#allocation5 + $0x1], 1 }

</bundles_post_ra>
